<compile_context>
chip_gen: v7x
topology: tpu7x:2x2x1
jax: 0.10.0
libtpu: 0.0.40
codegen_flags: <defaults>
</compile_context>

<pallas_src>
import math
import functools

import jax
import jax.numpy as jnp
from jax.experimental import pallas as pl
from jax.experimental.pallas import tpu as pltpu


def _round_up(x, m):
    return (x + m - 1) // m * m


def _pick_vmem_limit_bytes():
    """~75% of physical VMEM: ~48 MiB on v7x (64 MiB phys), ~96 MiB on v5e/v6e (128 MiB)."""
    try:
        cap = int(pltpu.get_tpu_info().vmem_capacity_bytes)
    except Exception:
        cap = 64 * 1024 * 1024
    return max(32 * 1024 * 1024, min(cap * 3 // 4, 100 * 1024 * 1024))


_VMEM_LIMIT = _pick_vmem_limit_bytes()
_MAX_FOLDED_ROWS = 1024     # cap on Bt*S rows resident per encoder block (VMEM safety)
_KV_BLOCK = 256             # flash-style KV tile width inside the attention block


def _pick_batch_tile(B, S):
    """Largest batch tile (amortizes weight DMA over Bt*S matmul rows) that still leaves
    >= 2 batch blocks when B >= 2 (v7x has 2 TensorCores) and respects the row cap."""
    best = 1
    for bt in range(1, B + 1):
        if B % bt:
            continue
        if bt * S > _MAX_FOLDED_ROWS:
            continue
        if B > 1 and B // bt < 2:
            continue
        best = bt
    return best


# --------------------------- in-kernel helpers ---------------------------

def _layernorm(x, w, b, eps=1e-5):
    mu = jnp.mean(x, axis=-1, keepdims=True)
    var = jnp.mean(jnp.square(x - mu), axis=-1, keepdims=True)
    return (x - mu) * jax.lax.rsqrt(var + eps) * w + b


def _causal_attention(qh, kh, vh):
    """qh/kh/vh: (G, S, hd) bf16 with G = batch_tile * heads.  Online-softmax over KV
    tiles so only (G, S, Tk) scores are ever live; returns (G, S, hd) f32."""
    G, S, hd = qh.shape
    Tk = min(S, _KV_BLOCK)
    m = jnp.full((G, S, 1), -1e30, jnp.float32)
    l = jnp.zeros((G, S, 1), jnp.float32)
    acc = jnp.zeros((G, S, hd), jnp.float32)
    for j in range(pl.cdiv(S, Tk)):            # static trip count -> unrolled at trace time
        lo = j * Tk
        hi = min(S, lo + Tk)
        w = hi - lo
        kj = kh[:, lo:hi, :]
        vj = vh[:, lo:hi, :]
        s = jnp.einsum('gqd,gkd->gqk', qh, kj, preferred_element_type=jnp.float32)
        rr = jax.lax.broadcasted_iota(jnp.int32, (S, w), 0)
        cc = jax.lax.broadcasted_iota(jnp.int32, (S, w), 1) + lo
        s = jnp.where((cc <= rr)[None], s, -1e30)            # causal mask, built in-kernel
        m_new = jnp.maximum(m, jnp.max(s, axis=-1, keepdims=True))
        a = jnp.exp(m - m_new)
        p = jnp.exp(s - m_new)
        l = a * l + jnp.sum(p, axis=-1, keepdims=True)
        acc = a * acc + jnp.einsum('gqk,gkd->gqd', p.astype(jnp.bfloat16), vj,
                                   preferred_element_type=jnp.float32)
        m = m_new
    return acc * pl.reciprocal(l, approx=True)


# --------------------------- Pallas kernels ---------------------------

def encoder_layers_kernel(x_ref, ln1_w_ref, ln1_b_ref,
                          wq_ref, bq_ref, wk_ref, bk_ref, wv_ref, bv_ref,
                          wo_ref, bo_ref, ln2_w_ref, ln2_b_ref,
                          w1_ref, b1_ref, w2_ref, b2_ref, out_ref, *, nhead):
    """Grid = (batch_tiles, layer). Residual stream stays resident in the out VMEM block."""
    layer = pl.program_id(1)

    @pl.when(layer == 0)
    def _():
        out_ref[...] = x_ref[...]          # seed the residual stream with the embedding

    xb = out_ref[...]                       # (Bt, S, D) f32, resident across the layer axis
    Bt, S, D = xb.shape
    R = Bt * S
    hd = D // nhead
    x = xb.reshape(R, D)

    # ---- self-attention block (pre-norm) ----
    h = _layernorm(x, ln1_w_ref[0], ln1_b_ref[0]).astype(jnp.bfloat16)
    # 1/sqrt(hd) is pre-folded into wq/bq.
    q = jnp.dot(h, wq_ref[0], preferred_element_type=jnp.float32) + bq_ref[0]
    k = jnp.dot(h, wk_ref[0], preferred_element_type=jnp.float32) + bk_ref[0]
    v = jnp.dot(h, wv_ref[0], preferred_element_type=jnp.float32) + bv_ref[0]

    def heads(t):
        # (R, D) -> (Bt*H, S, hd) bf16.
        # TODO(synk): perform this relayout in bf16 (pre-cast) to halve relayout bytes
        # once packed-dtype transposes are validated on the target Mosaic toolchain.
        return (t.reshape(Bt, S, nhead, hd).transpose(0, 2, 1, 3)
                 .reshape(Bt * nhead, S, hd).astype(jnp.bfloat16))

    attn = _causal_attention(heads(q), heads(k), heads(v))          # (Bt*H, S, hd) f32
    attn = (attn.reshape(Bt, nhead, S, hd).transpose(0, 2, 1, 3)
                .reshape(R, D).astype(jnp.bfloat16))
    attn = jnp.dot(attn, wo_ref[0], preferred_element_type=jnp.float32) + bo_ref[0]
    x = x + attn                                                     # dropout == identity

    # ---- feed-forward block (pre-norm) ----
    h = _layernorm(x, ln2_w_ref[0], ln2_b_ref[0]).astype(jnp.bfloat16)
    h = jnp.dot(h, w1_ref[0], preferred_element_type=jnp.float32) + b1_ref[0]
    h = 0.5 * h * (1.0 + jax.lax.erf(h * (1.0 / math.sqrt(2.0))))    # exact GELU, f32
    # TODO(synk): tile the FFN hidden dim F (inner pipeline over w1/w2) for production F.
    # TODO(synk): GELU could run in bf16 on v6e/v7x; kept f32 (v5e has no bf16 VPU/EUP).
    h = jnp.dot(h.astype(jnp.bfloat16), w2_ref[0],
                preferred_element_type=jnp.float32) + b2_ref[0]
    out_ref[...] = (x + h).reshape(Bt, S, D)


def final_norm_head_kernel(x_ref, ln_w_ref, ln_b_ref, w_ref, b_ref, out_ref, h_ref):
    """Final encoder LayerNorm + lm_head projection.  Vocab is the inner 'arbitrary' grid
    axis; the normalized bf16 activations are computed once per row tile into h_ref."""
    @pl.when(pl.program_id(1) == 0)
    def _():
        h_ref[...] = _layernorm(x_ref[...], ln_w_ref[...], ln_b_ref[...]).astype(jnp.bfloat16)
    out_ref[...] = (jnp.dot(h_ref[...], w_ref[...], preferred_element_type=jnp.float32)
                    + b_ref[...]).astype(out_ref.dtype)


# --------------------------- wrappers ---------------------------

def run_encoder_stack(x, prep, nhead):
    B, S, D = x.shape
    L, _, F = prep['w1'].shape
    Bt = _pick_batch_tile(B, S)

    def wspec(shape_tail):
        return pl.BlockSpec((1,) + shape_tail, lambda b, l: (l, 0, 0))

    in_specs = [
        pl.BlockSpec((Bt, S, D), lambda b, l: (b, 0, 0)),   # x (embedding), batch-folded
        wspec((1, D)), wspec((1, D)),                       # ln1 w, b
        wspec((D, D)), wspec((1, D)),                       # wq, bq
        wspec((D, D)), wspec((1, D)),                       # wk, bk
        wspec((D, D)), wspec((1, D)),                       # wv, bv
        wspec((D, D)), wspec((1, D)),                       # wo, bo
        wspec((1, D)), wspec((1, D)),                       # ln2 w, b
        wspec((D, F)), wspec((1, F)),                       # w1, b1
        wspec((F, D)), wspec((1, D)),                       # w2, b2
    ]
    args = (x,
            prep['ln1_w'], prep['ln1_b'],
            prep['wq'], prep['bq'], prep['wk'], prep['bk'], prep['wv'], prep['bv'],
            prep['wo'], prep['bo'],
            prep['ln2_w'], prep['ln2_b'],
            prep['w1'], prep['b1'], prep['w2'], prep['b2'])

    return pl.pallas_call(
        functools.partial(encoder_layers_kernel, nhead=nhead),
        out_shape=jax.ShapeDtypeStruct((B, S, D), jnp.float32),
        grid=(B // Bt, L),
        in_specs=in_specs,
        out_specs=pl.BlockSpec((Bt, S, D), lambda b, l: (b, 0, 0)),
        compiler_params=pltpu.CompilerParams(
            dimension_semantics=("parallel", "arbitrary"),
            vmem_limit_bytes=_VMEM_LIMIT),
    )(*args)


def run_final_head(x, prep, out_dtype=jnp.float32):
    # TODO(synk): out_dtype=jnp.bfloat16 halves the dominant HBM writeback for big vocabs.
    B, S, D = x.shape
    Vp = prep['head_w'].shape[1]                     # already padded to multiple of 128
    BS = B * S
    xf = x.reshape(BS, D)

    tile_r = min(512, _round_up(BS, 8))
    BS_pad = _round_up(BS, tile_r)
    if BS_pad != BS:
        xf = jnp.pad(xf, ((0, BS_pad - BS), (0, 0)))
    tile_v = next(t for t in (2048, 1024, 512, 256, 128) if Vp % t == 0)
    grid = (BS_pad // tile_r, Vp // tile_v)

    out = pl.pallas_call(
        final_norm_head_kernel,
        out_shape=jax.ShapeDtypeStruct((BS_pad, Vp), out_dtype),
        grid=grid,
        in_specs=[
            pl.BlockSpec((tile_r, D), lambda i, j: (i, 0)),
            pl.BlockSpec((1, D), lambda i, j: (0, 0)),
            pl.BlockSpec((1, D), lambda i, j: (0, 0)),
            pl.BlockSpec((D, tile_v), lambda i, j: (0, j)),
            pl.BlockSpec((1, tile_v), lambda i, j: (0, j)),
        ],
        out_specs=pl.BlockSpec((tile_r, tile_v), lambda i, j: (i, j)),
        scratch_shapes=[pltpu.VMEM((tile_r, D), jnp.bfloat16)],
        compiler_params=pltpu.CompilerParams(
            dimension_semantics=("parallel", "arbitrary"),
            vmem_limit_bytes=_VMEM_LIMIT),
    )(xf, prep['final_ln_w'], prep['final_ln_b'], prep['head_w'], prep['head_b'])
    return out


def simple_transformer_lm_forward(src, params, prep, nhead):
    """src: (B, S) int32 token ids -> logits (B, S, vocab)."""
    B, S = src.shape
    D = params['tok_emb'].shape[1]
    V = params['head_w'].shape[1]
    # TODO(synk): embedding gather kept in XLA (data-dependent row gather).
    emb = jnp.take(params['tok_emb'], src, axis=0) * math.sqrt(D)
    x = (emb + params['pos'][0, :S, :][None, :, :]).astype(jnp.float32)
    x = run_encoder_stack(x, prep, nhead)
    logits = run_final_head(x, prep)
    return logits[:B * S, :V].reshape(B, S, V)


# --------------------------- parameter init & prep ---------------------------

def init_params(key, vocab, D, nhead, nlayers, F, max_len):
    keys = jax.random.split(key, 4 + nlayers)
    p = {
        'tok_emb': jax.random.normal(keys[0], (vocab, D), jnp.float32),
        'pos': 0.02 * jax.random.normal(keys[1], (1, max_len, D), jnp.float32),
        'head_w': 0.05 * jax.random.normal(keys[2], (D, vocab), jnp.float32),
        'head_b': 0.05 * jax.random.normal(keys[3], (vocab,), jnp.float32),
        'final_ln_w': jnp.ones((D,), jnp.float32),
        'final_ln_b': jnp.zeros((D,), jnp.float32),
        'layers': [],
    }
    for i in range(nlayers):
        lk = jax.random.split(keys[4 + i], 8)
        p['layers'].append(dict(
            ln1_w=jnp.ones((D,), jnp.float32), ln1_b=jnp.zeros((D,), jnp.float32),
            wqkv=0.05 * jax.random.normal(lk[0], (D, 3 * D), jnp.float32),
            bqkv=0.05 * jax.random.normal(lk[1], (3 * D,), jnp.float32),
            wo=0.05 * jax.random.normal(lk[2], (D, D), jnp.float32),
            bo=0.05 * jax.random.normal(lk[3], (D,), jnp.float32),
            ln2_w=jnp.ones((D,), jnp.float32), ln2_b=jnp.zeros((D,), jnp.float32),
            w1=0.05 * jax.random.normal(lk[4], (D, F), jnp.float32),
            b1=0.05 * jax.random.normal(lk[5], (F,), jnp.float32),
            w2=0.05 * jax.random.normal(lk[6], (F, D), jnp.float32),
            b2=0.05 * jax.random.normal(lk[7], (D,), jnp.float32),
        ))
    return p


def prepare_params(params, nhead):
    """One-time host-side prep: split QKV, fold 1/sqrt(hd), stack layers, cast bf16, pad vocab."""
    D = params['tok_emb'].shape[1]
    hd = D // nhead
    scale = 1.0 / math.sqrt(hd)
    layers = params['layers']
    bf = jnp.bfloat16

    def stack_w(name):
        return jnp.stack([lp[name] for lp in layers], axis=0)

    def stack_b(name):
        return jnp.stack([lp[name] for lp in layers], axis=0)[:, None, :]   # (L, 1, X)

    wq = jnp.stack([lp['wqkv'][:, :D] for lp in layers], axis=0) * scale
    wk = jnp.stack([lp['wqkv'][:, D:2 * D] for lp in layers], axis=0)
    wv = jnp.stack([lp['wqkv'][:, 2 * D:] for lp in layers], axis=0)
    bq = jnp.stack([lp['bqkv'][:D] for lp in layers], axis=0)[:, None, :] * scale
    bk = jnp.stack([lp['bqkv'][D:2 * D] for lp in layers], axis=0)[:, None, :]
    bv = jnp.stack([lp['bqkv'][2 * D:] for lp in layers], axis=0)[:, None, :]

    prep = dict(
        ln1_w=stack_b('ln1_w'), ln1_b=stack_b('ln1_b'),
        wq=wq.astype(bf), bq=bq, wk=wk.astype(bf), bk=bk, wv=wv.astype(bf), bv=bv,
        wo=stack_w('wo').astype(bf), bo=stack_b('bo'),
        ln2_w=stack_b('ln2_w'), ln2_b=stack_b('ln2_b'),
        w1=stack_w('w1').astype(bf), b1=stack_b('b1'),
        w2=stack_w('w2').astype(bf), b2=stack_b('b2'),
    )
    # lm_head: pad vocab to a lane-dense multiple of 128
    V = params['head_w'].shape[1]
    Vp = _round_up(V, 128)
    prep['head_w'] = jnp.pad(params['head_w'], ((0, 0), (0, Vp - V))).astype(bf)
    prep['head_b'] = jnp.pad(params['head_b'], (0, Vp - V))[None, :]
    prep['final_ln_w'] = params['final_ln_w'][None, :]
    prep['final_ln_b'] = params['final_ln_b'][None, :]
    return prep


# --------------------------- pure-JAX reference (f32) ---------------------------

def reference_forward(src, params, nhead):
    D = params['tok_emb'].shape[1]
    B, S = src.shape
    hd = D // nhead
    x = jnp.take(params['tok_emb'], src, axis=0) * math.sqrt(D) + params['pos'][0, :S][None]
    causal = jnp.arange(S)[None, :] <= jnp.arange(S)[:, None]

    def ln(x, w, b, eps=1e-5):
        mu = x.mean(-1, keepdims=True)
        var = ((x - mu) ** 2).mean(-1, keepdims=True)
        return (x - mu) / jnp.sqrt(var + eps) * w + b

    for lp in params['layers']:
        h = ln(x, lp['ln1_w'], lp['ln1_b'])
        qkv = h @ lp['wqkv'] + lp['bqkv']
        q, k, v = jnp.split(qkv, 3, axis=-1)
        q = q.reshape(B, S, nhead, hd).transpose(0, 2, 1, 3) / math.sqrt(hd)
        k = k.reshape(B, S, nhead, hd).transpose(0, 2, 1, 3)
        v = v.reshape(B, S, nhead, hd).transpose(0, 2, 1, 3)
        s = jnp.einsum('bhqd,bhkd->bhqk', q, k)
        s = jnp.where(causal[None, None], s, -1e30)
        p = jax.nn.softmax(s, axis=-1)
        a = jnp.einsum('bhqk,bhkd->bhqd', p, v).transpose(0, 2, 1, 3).reshape(B, S, D)
        x = x + a @ lp['wo'] + lp['bo']
        h = ln(x, lp['ln2_w'], lp['ln2_b'])
        h = h @ lp['w1'] + lp['b1']
        h = 0.5 * h * (1.0 + jax.lax.erf(h / math.sqrt(2.0)))
        x = x + h @ lp['w2'] + lp['b2']
    h = ln(x, params['final_ln_w'], params['final_ln_b'])
    return h @ params['head_w'] + params['head_b']


# --------------------------- main ---------------------------

if __name__ == "__main__":
    VOCAB = 64
    EMBED_DIM = 32
    NHEAD = 4
    NUM_LAYERS = 2
    DIM_FF = 64
    MAX_SEQ_LEN = 16
    BATCH = 2
    SEQ = 8

    key = jax.random.PRNGKey(0)
    k_params, k_src = jax.random.split(key)
    params = init_params(k_params, VOCAB, EMBED_DIM, NHEAD, NUM_LAYERS, DIM_FF, MAX_SEQ_LEN)
    prep = prepare_params(params, NHEAD)
    src = jax.random.randint(k_src, (BATCH, SEQ), 0, VOCAB, dtype=jnp.int32)

    logits = simple_transformer_lm_forward(src, params, prep, NHEAD)
    logits = jax.block_until_ready(logits)

    assert logits.shape == (BATCH, SEQ, VOCAB)
    assert bool(jnp.all(jnp.isfinite(logits)))

    ref = reference_forward(src, params, NHEAD)
    max_diff = float(jnp.max(jnp.abs(logits - ref)))
    assert max_diff < 1e-1, f"mismatch vs f32 reference: max|diff|={max_diff}"
    print("KERNEL_OK")
</pallas_src>

<mosaic_0001>
module attributes {stable_mosaic.version = 11 : i64} {
  func.func @encoder_layers_kernel(%arg0: i32, %arg1: i32, %arg2: memref<1x8x32xf32, #tpu.memory_space<vmem>>, %arg3: memref<1x1x32xf32, #tpu.memory_space<vmem>>, %arg4: memref<1x1x32xf32, #tpu.memory_space<vmem>>, %arg5: memref<1x32x32xbf16, #tpu.memory_space<vmem>>, %arg6: memref<1x1x32xf32, #tpu.memory_space<vmem>>, %arg7: memref<1x32x32xbf16, #tpu.memory_space<vmem>>, %arg8: memref<1x1x32xf32, #tpu.memory_space<vmem>>, %arg9: memref<1x32x32xbf16, #tpu.memory_space<vmem>>, %arg10: memref<1x1x32xf32, #tpu.memory_space<vmem>>, %arg11: memref<1x32x32xbf16, #tpu.memory_space<vmem>>, %arg12: memref<1x1x32xf32, #tpu.memory_space<vmem>>, %arg13: memref<1x1x32xf32, #tpu.memory_space<vmem>>, %arg14: memref<1x1x32xf32, #tpu.memory_space<vmem>>, %arg15: memref<1x32x64xbf16, #tpu.memory_space<vmem>>, %arg16: memref<1x1x64xf32, #tpu.memory_space<vmem>>, %arg17: memref<1x64x32xbf16, #tpu.memory_space<vmem>>, %arg18: memref<1x1x32xf32, #tpu.memory_space<vmem>>, %arg19: memref<1x8x32xf32, #tpu.memory_space<vmem>>) attributes {dimension_semantics = [#tpu.dimension_semantics<parallel>, #tpu.dimension_semantics<arbitrary>], iteration_bounds = array<i64: 2, 2>, scalar_prefetch = 0 : i64, scratch_operands = 0 : i64, tpu.core_type = #tpu.core_type<tc>, window_params = [{transform_indices = @transform_0, window_bounds = array<i64: 1, 8, 32>}, {transform_indices = @transform_1, window_bounds = array<i64: 1, 1, 32>}, {transform_indices = @transform_2, window_bounds = array<i64: 1, 1, 32>}, {transform_indices = @transform_3, window_bounds = array<i64: 1, 32, 32>}, {transform_indices = @transform_4, window_bounds = array<i64: 1, 1, 32>}, {transform_indices = @transform_5, window_bounds = array<i64: 1, 32, 32>}, {transform_indices = @transform_6, window_bounds = array<i64: 1, 1, 32>}, {transform_indices = @transform_7, window_bounds = array<i64: 1, 32, 32>}, {transform_indices = @transform_8, window_bounds = array<i64: 1, 1, 32>}, {transform_indices = @transform_9, window_bounds = array<i64: 1, 32, 32>}, {transform_indices = @transform_10, window_bounds = array<i64: 1, 1, 32>}, {transform_indices = @transform_11, window_bounds = array<i64: 1, 1, 32>}, {transform_indices = @transform_12, window_bounds = array<i64: 1, 1, 32>}, {transform_indices = @transform_13, window_bounds = array<i64: 1, 32, 64>}, {transform_indices = @transform_14, window_bounds = array<i64: 1, 1, 64>}, {transform_indices = @transform_15, window_bounds = array<i64: 1, 64, 32>}, {transform_indices = @transform_16, window_bounds = array<i64: 1, 1, 32>}, {transform_indices = @transform_17, window_bounds = array<i64: 1, 8, 32>}]} {
    %c0_i32 = arith.constant 0 : i32
    %0 = arith.cmpi eq, %arg1, %c0_i32 : i32
    %1 = arith.extui %0 : i1 to i32
    %c0_i32_0 = arith.constant 0 : i32
    %2 = arith.cmpi ne, %1, %c0_i32_0 : i32
    scf.if %2 {
      %c0_81 = arith.constant 0 : index
      %c0_82 = arith.constant 0 : index
      %c0_83 = arith.constant 0 : index
      %164 = vector.load %arg2[%c0_81, %c0_82, %c0_83] : memref<1x8x32xf32, #tpu.memory_space<vmem>>, vector<1x8x32xf32>
      %c0_84 = arith.constant 0 : index
      %c0_85 = arith.constant 0 : index
      %c0_86 = arith.constant 0 : index
      %165 = vector.load %arg19[%c0_84, %c0_85, %c0_86] : memref<1x8x32xf32, #tpu.memory_space<vmem>>, vector<1x8x32xf32>
      tpu.vector_store %arg19[%c0_84, %c0_85, %c0_86], %164 {strides = array<i32>} : memref<1x8x32xf32, #tpu.memory_space<vmem>>, vector<1x8x32xf32>,
    } else {
    }
    %c0 = arith.constant 0 : index
    %c0_1 = arith.constant 0 : index
    %c0_2 = arith.constant 0 : index
    %3 = vector.load %arg19[%c0, %c0_1, %c0_2] : memref<1x8x32xf32, #tpu.memory_space<vmem>>, vector<1x8x32xf32>
    %4 = vector.shape_cast %3 : vector<1x8x32xf32> to vector<8x32xf32>
    %c0_3 = arith.constant 0 : index
    %c0_4 = arith.constant 0 : index
    %c0_5 = arith.constant 0 : index
    %5 = vector.load %arg3[%c0_3, %c0_4, %c0_5] : memref<1x1x32xf32, #tpu.memory_space<vmem>>, vector<1x1x32xf32>
    %6 = vector.shape_cast %5 : vector<1x1x32xf32> to vector<1x32xf32>
    %c0_6 = arith.constant 0 : index
    %c0_7 = arith.constant 0 : index
    %c0_8 = arith.constant 0 : index
    %7 = vector.load %arg4[%c0_6, %c0_7, %c0_8] : memref<1x1x32xf32, #tpu.memory_space<vmem>>, vector<1x1x32xf32>
    %8 = vector.shape_cast %7 : vector<1x1x32xf32> to vector<1x32xf32>
    %cst = arith.constant dense<0.000000e+00> : vector<8xf32>
    %9 = vector.multi_reduction <add>, %4, %cst [1] : vector<8x32xf32> to vector<8xf32>
    %10 = vector.shape_cast %9 : vector<8xf32> to vector<8x1xf32>
    %cst_9 = arith.constant 3.200000e+01 : f32
    %11 = vector.broadcast %cst_9 : f32 to vector<8x1xf32>
    %12 = arith.divf %10, %11 : vector<8x1xf32>
    %13 = vector.broadcast %12 : vector<8x1xf32> to vector<8x32xf32>
    %14 = arith.subf %4, %13 : vector<8x32xf32>
    %15 = arith.mulf %14, %14 : vector<8x32xf32>
    %cst_10 = arith.constant dense<0.000000e+00> : vector<8xf32>
    %16 = vector.multi_reduction <add>, %15, %cst_10 [1] : vector<8x32xf32> to vector<8xf32>
    %17 = vector.shape_cast %16 : vector<8xf32> to vector<8x1xf32>
    %cst_11 = arith.constant 3.200000e+01 : f32
    %18 = vector.broadcast %cst_11 : f32 to vector<8x1xf32>
    %19 = arith.divf %17, %18 : vector<8x1xf32>
    %20 = vector.broadcast %12 : vector<8x1xf32> to vector<8x32xf32>
    %21 = arith.subf %4, %20 : vector<8x32xf32>
    %cst_12 = arith.constant 9.99999974E-6 : f32
    %22 = vector.broadcast %cst_12 : f32 to vector<8x1xf32>
    %23 = arith.addf %19, %22 : vector<8x1xf32>
    %24 = math.rsqrt %23 : vector<8x1xf32>
    %25 = vector.broadcast %24 : vector<8x1xf32> to vector<8x32xf32>
    %26 = arith.mulf %21, %25 : vector<8x32xf32>
    %27 = vector.broadcast %6 : vector<1x32xf32> to vector<8x32xf32>
    %28 = arith.mulf %26, %27 : vector<8x32xf32>
    %29 = vector.broadcast %8 : vector<1x32xf32> to vector<8x32xf32>
    %30 = arith.addf %28, %29 : vector<8x32xf32>
    %31 = arith.truncf %30 : vector<8x32xf32> to vector<8x32xbf16>
    %c0_13 = arith.constant 0 : index
    %c0_14 = arith.constant 0 : index
    %c0_15 = arith.constant 0 : index
    %32 = vector.load %arg5[%c0_13, %c0_14, %c0_15] : memref<1x32x32xbf16, #tpu.memory_space<vmem>>, vector<1x32x32xbf16>
    %33 = vector.shape_cast %32 : vector<1x32x32xbf16> to vector<32x32xbf16>
    %cst_16 = arith.constant dense<0.000000e+00> : vector<8x32xf32>
    %34 = tpu.matmul %31, %33, %cst_16 {dimension_numbers = #tpu.dot_dimension_numbers<[1], [0], [0], [1], [0, 0, 1, 1], [], []>} : vector<8x32xbf16>, vector<32x32xbf16>, vector<8x32xf32> -> vector<8x32xf32>
    %c0_17 = arith.constant 0 : index
    %c0_18 = arith.constant 0 : index
    %c0_19 = arith.constant 0 : index
    %35 = vector.load %arg6[%c0_17, %c0_18, %c0_19] : memref<1x1x32xf32, #tpu.memory_space<vmem>>, vector<1x1x32xf32>
    %36 = vector.shape_cast %35 : vector<1x1x32xf32> to vector<1x32xf32>
    %37 = vector.broadcast %36 : vector<1x32xf32> to vector<8x32xf32>
    %38 = arith.addf %34, %37 : vector<8x32xf32>
    %c0_20 = arith.constant 0 : index
    %c0_21 = arith.constant 0 : index
    %c0_22 = arith.constant 0 : index
    %39 = vector.load %arg7[%c0_20, %c0_21, %c0_22] : memref<1x32x32xbf16, #tpu.memory_space<vmem>>, vector<1x32x32xbf16>
    %40 = vector.shape_cast %39 : vector<1x32x32xbf16> to vector<32x32xbf16>
    %cst_23 = arith.constant dense<0.000000e+00> : vector<8x32xf32>
    %41 = tpu.matmul %31, %40, %cst_23 {dimension_numbers = #tpu.dot_dimension_numbers<[1], [0], [0], [1], [0, 0, 1, 1], [], []>} : vector<8x32xbf16>, vector<32x32xbf16>, vector<8x32xf32> -> vector<8x32xf32>
    %c0_24 = arith.constant 0 : index
    %c0_25 = arith.constant 0 : index
    %c0_26 = arith.constant 0 : index
    %42 = vector.load %arg8[%c0_24, %c0_25, %c0_26] : memref<1x1x32xf32, #tpu.memory_space<vmem>>, vector<1x1x32xf32>
    %43 = vector.shape_cast %42 : vector<1x1x32xf32> to vector<1x32xf32>
    %44 = vector.broadcast %43 : vector<1x32xf32> to vector<8x32xf32>
    %45 = arith.addf %41, %44 : vector<8x32xf32>
    %c0_27 = arith.constant 0 : index
    %c0_28 = arith.constant 0 : index
    %c0_29 = arith.constant 0 : index
    %46 = vector.load %arg9[%c0_27, %c0_28, %c0_29] : memref<1x32x32xbf16, #tpu.memory_space<vmem>>, vector<1x32x32xbf16>
    %47 = vector.shape_cast %46 : vector<1x32x32xbf16> to vector<32x32xbf16>
    %cst_30 = arith.constant dense<0.000000e+00> : vector<8x32xf32>
    %48 = tpu.matmul %31, %47, %cst_30 {dimension_numbers = #tpu.dot_dimension_numbers<[1], [0], [0], [1], [0, 0, 1, 1], [], []>} : vector<8x32xbf16>, vector<32x32xbf16>, vector<8x32xf32> -> vector<8x32xf32>
    %c0_31 = arith.constant 0 : index
    %c0_32 = arith.constant 0 : index
    %c0_33 = arith.constant 0 : index
    %49 = vector.load %arg10[%c0_31, %c0_32, %c0_33] : memref<1x1x32xf32, #tpu.memory_space<vmem>>, vector<1x1x32xf32>
    %50 = vector.shape_cast %49 : vector<1x1x32xf32> to vector<1x32xf32>
    %51 = vector.broadcast %50 : vector<1x32xf32> to vector<8x32xf32>
    %52 = arith.addf %48, %51 : vector<8x32xf32>
    %53 = vector.shape_cast %38 : vector<8x32xf32> to vector<1x8x4x8xf32>
    %54 = tpu.transpose %53, [0, 2, 1, 3] : vector<1x8x4x8xf32> -> vector<1x4x8x8xf32>
    %55 = vector.shape_cast %54 : vector<1x4x8x8xf32> to vector<4x8x8xf32>
    %56 = arith.truncf %55 : vector<4x8x8xf32> to vector<4x8x8xbf16>
    %57 = vector.shape_cast %45 : vector<8x32xf32> to vector<1x8x4x8xf32>
    %58 = tpu.transpose %57, [0, 2, 1, 3] : vector<1x8x4x8xf32> -> vector<1x4x8x8xf32>
    %59 = vector.shape_cast %58 : vector<1x4x8x8xf32> to vector<4x8x8xf32>
    %60 = arith.truncf %59 : vector<4x8x8xf32> to vector<4x8x8xbf16>
    %61 = vector.shape_cast %52 : vector<8x32xf32> to vector<1x8x4x8xf32>
    %62 = tpu.transpose %61, [0, 2, 1, 3] : vector<1x8x4x8xf32> -> vector<1x4x8x8xf32>
    %63 = vector.shape_cast %62 : vector<1x4x8x8xf32> to vector<4x8x8xf32>
    %64 = arith.truncf %63 : vector<4x8x8xf32> to vector<4x8x8xbf16>
    %cst_34 = arith.constant -1.000000e+30 : f32
    %65 = vector.broadcast %cst_34 : f32 to vector<4x8x1xf32>
    %cst_35 = arith.constant 0.000000e+00 : f32
    %66 = vector.broadcast %cst_35 : f32 to vector<4x8x1xf32>
    %cst_36 = arith.constant 0.000000e+00 : f32
    %67 = vector.broadcast %cst_36 : f32 to vector<4x8x8xf32>
    "tpu.trace_start"() <{level = 10 : i32, message = "gqd,gkd->gqk"}> : () -> ()
    %cst_37 = arith.constant dense<0.000000e+00> : vector<4x8x8xf32>
    %68 = tpu.matmul %56, %60, %cst_37 {dimension_numbers = #tpu.dot_dimension_numbers<[2], [2], [1], [1], [0, 0, 0, 1, 1, 1], [0], [0]>} : vector<4x8x8xbf16>, vector<4x8x8xbf16>, vector<4x8x8xf32> -> vector<4x8x8xf32>
    "tpu.trace_stop"() : () -> ()
    %69 = tpu.iota {dimensions = array<i32: 0>} : vector<8x8xi32>
    %70 = tpu.iota {dimensions = array<i32: 1>} : vector<8x8xi32>
    %c0_i32_38 = arith.constant 0 : i32
    %71 = vector.broadcast %c0_i32_38 : i32 to vector<8x8xi32>
    %72 = arith.addi %70, %71 : vector<8x8xi32>
    %73 = arith.cmpi sle, %72, %69 : vector<8x8xi32>
    %74 = vector.shape_cast %73 : vector<8x8xi1> to vector<1x8x8xi1>
    %cst_39 = arith.constant -1.000000e+30 : f32
    %75 = vector.shape_cast %74 : vector<1x8x8xi1> to vector<1x8x8xi1>
    %76 = vector.broadcast %75 : vector<1x8x8xi1> to vector<4x8x8xi1>
    %77 = vector.broadcast %cst_39 : f32 to vector<4x8x8xf32>
    %78 = arith.select %76, %68, %77 : vector<4x8x8xi1>, vector<4x8x8xf32>
    %cst_40 = arith.constant dense<0xFF800000> : vector<4x8xf32>
    %79 = vector.multi_reduction <maximumf>, %78, %cst_40 [2] : vector<4x8x8xf32> to vector<4x8xf32>
    %80 = vector.shape_cast %79 : vector<4x8xf32> to vector<4x8x1xf32>
    %81 = arith.maximumf %65, %80 : vector<4x8x1xf32>
    %82 = arith.subf %65, %81 : vector<4x8x1xf32>
    %83 = math.exp %82 : vector<4x8x1xf32>
    %84 = vector.broadcast %81 : vector<4x8x1xf32> to vector<4x8x8xf32>
    %85 = arith.subf %78, %84 : vector<4x8x8xf32>
    %86 = math.exp %85 : vector<4x8x8xf32>
    %87 = arith.mulf %83, %66 : vector<4x8x1xf32>
    %cst_41 = arith.constant dense<0.000000e+00> : vector<4x8xf32>
    %88 = vector.multi_reduction <add>, %86, %cst_41 [2] : vector<4x8x8xf32> to vector<4x8xf32>
    %89 = vector.shape_cast %88 : vector<4x8xf32> to vector<4x8x1xf32>
    %90 = arith.addf %87, %89 : vector<4x8x1xf32>
    %91 = vector.broadcast %83 : vector<4x8x1xf32> to vector<4x8x8xf32>
    %92 = arith.mulf %91, %67 : vector<4x8x8xf32>
    %93 = arith.truncf %86 : vector<4x8x8xf32> to vector<4x8x8xbf16>
    "tpu.trace_start"() <{level = 10 : i32, message = "gqk,gkd->gqd"}> : () -> ()
    %cst_42 = arith.constant dense<0.000000e+00> : vector<4x8x8xf32>
    %94 = tpu.matmul %93, %64, %cst_42 {dimension_numbers = #tpu.dot_dimension_numbers<[2], [1], [1], [2], [0, 0, 0, 1, 1, 2], [0], [0]>} : vector<4x8x8xbf16>, vector<4x8x8xbf16>, vector<4x8x8xf32> -> vector<4x8x8xf32>
    "tpu.trace_stop"() : () -> ()
    %95 = arith.addf %92, %94 : vector<4x8x8xf32>
    %96 = tpu.reciprocal %90 {approx = true} : vector<4x8x1xf32> -> vector<4x8x1xf32>
    %97 = vector.broadcast %96 : vector<4x8x1xf32> to vector<4x8x8xf32>
    %98 = arith.mulf %95, %97 : vector<4x8x8xf32>
    %99 = vector.shape_cast %98 : vector<4x8x8xf32> to vector<1x4x8x8xf32>
    %100 = tpu.transpose %99, [0, 2, 1, 3] : vector<1x4x8x8xf32> -> vector<1x8x4x8xf32>
    %101 = vector.shape_cast %100 : vector<1x8x4x8xf32> to vector<8x32xf32>
    %102 = arith.truncf %101 : vector<8x32xf32> to vector<8x32xbf16>
    %c0_43 = arith.constant 0 : index
    %c0_44 = arith.constant 0 : index
    %c0_45 = arith.constant 0 : index
    %103 = vector.load %arg11[%c0_43, %c0_44, %c0_45] : memref<1x32x32xbf16, #tpu.memory_space<vmem>>, vector<1x32x32xbf16>
    %104 = vector.shape_cast %103 : vector<1x32x32xbf16> to vector<32x32xbf16>
    %cst_46 = arith.constant dense<0.000000e+00> : vector<8x32xf32>
    %105 = tpu.matmul %102, %104, %cst_46 {dimension_numbers = #tpu.dot_dimension_numbers<[1], [0], [0], [1], [0, 0, 1, 1], [], []>} : vector<8x32xbf16>, vector<32x32xbf16>, vector<8x32xf32> -> vector<8x32xf32>
    %c0_47 = arith.constant 0 : index
    %c0_48 = arith.constant 0 : index
    %c0_49 = arith.constant 0 : index
    %106 = vector.load %arg12[%c0_47, %c0_48, %c0_49] : memref<1x1x32xf32, #tpu.memory_space<vmem>>, vector<1x1x32xf32>
    %107 = vector.shape_cast %106 : vector<1x1x32xf32> to vector<1x32xf32>
    %108 = vector.broadcast %107 : vector<1x32xf32> to vector<8x32xf32>
    %109 = arith.addf %105, %108 : vector<8x32xf32>
    %110 = arith.addf %4, %109 : vector<8x32xf32>
    %c0_50 = arith.constant 0 : index
    %c0_51 = arith.constant 0 : index
    %c0_52 = arith.constant 0 : index
    %111 = vector.load %arg13[%c0_50, %c0_51, %c0_52] : memref<1x1x32xf32, #tpu.memory_space<vmem>>, vector<1x1x32xf32>
    %112 = vector.shape_cast %111 : vector<1x1x32xf32> to vector<1x32xf32>
    %c0_53 = arith.constant 0 : index
    %c0_54 = arith.constant 0 : index
    %c0_55 = arith.constant 0 : index
    %113 = vector.load %arg14[%c0_53, %c0_54, %c0_55] : memref<1x1x32xf32, #tpu.memory_space<vmem>>, vector<1x1x32xf32>
    %114 = vector.shape_cast %113 : vector<1x1x32xf32> to vector<1x32xf32>
    %cst_56 = arith.constant dense<0.000000e+00> : vector<8xf32>
    %115 = vector.multi_reduction <add>, %110, %cst_56 [1] : vector<8x32xf32> to vector<8xf32>
    %116 = vector.shape_cast %115 : vector<8xf32> to vector<8x1xf32>
    %cst_57 = arith.constant 3.200000e+01 : f32
    %117 = vector.broadcast %cst_57 : f32 to vector<8x1xf32>
    %118 = arith.divf %116, %117 : vector<8x1xf32>
    %119 = vector.broadcast %118 : vector<8x1xf32> to vector<8x32xf32>
    %120 = arith.subf %110, %119 : vector<8x32xf32>
    %121 = arith.mulf %120, %120 : vector<8x32xf32>
    %cst_58 = arith.constant dense<0.000000e+00> : vector<8xf32>
    %122 = vector.multi_reduction <add>, %121, %cst_58 [1] : vector<8x32xf32> to vector<8xf32>
    %123 = vector.shape_cast %122 : vector<8xf32> to vector<8x1xf32>
    %cst_59 = arith.constant 3.200000e+01 : f32
    %124 = vector.broadcast %cst_59 : f32 to vector<8x1xf32>
    %125 = arith.divf %123, %124 : vector<8x1xf32>
    %126 = vector.broadcast %118 : vector<8x1xf32> to vector<8x32xf32>
    %127 = arith.subf %110, %126 : vector<8x32xf32>
    %cst_60 = arith.constant 9.99999974E-6 : f32
    %128 = vector.broadcast %cst_60 : f32 to vector<8x1xf32>
    %129 = arith.addf %125, %128 : vector<8x1xf32>
    %130 = math.rsqrt %129 : vector<8x1xf32>
    %131 = vector.broadcast %130 : vector<8x1xf32> to vector<8x32xf32>
    %132 = arith.mulf %127, %131 : vector<8x32xf32>
    %133 = vector.broadcast %112 : vector<1x32xf32> to vector<8x32xf32>
    %134 = arith.mulf %132, %133 : vector<8x32xf32>
    %135 = vector.broadcast %114 : vector<1x32xf32> to vector<8x32xf32>
    %136 = arith.addf %134, %135 : vector<8x32xf32>
    %137 = arith.truncf %136 : vector<8x32xf32> to vector<8x32xbf16>
    %c0_61 = arith.constant 0 : index
    %c0_62 = arith.constant 0 : index
    %c0_63 = arith.constant 0 : index
    %138 = vector.load %arg15[%c0_61, %c0_62, %c0_63] : memref<1x32x64xbf16, #tpu.memory_space<vmem>>, vector<1x32x64xbf16>
    %139 = vector.shape_cast %138 : vector<1x32x64xbf16> to vector<32x64xbf16>
    %cst_64 = arith.constant dense<0.000000e+00> : vector<8x64xf32>
    %140 = tpu.matmul %137, %139, %cst_64 {dimension_numbers = #tpu.dot_dimension_numbers<[1], [0], [0], [1], [0, 0, 1, 1], [], []>} : vector<8x32xbf16>, vector<32x64xbf16>, vector<8x64xf32> -> vector<8x64xf32>
    %c0_65 = arith.constant 0 : index
    %c0_66 = arith.constant 0 : index
    %c0_67 = arith.constant 0 : index
    %141 = vector.load %arg16[%c0_65, %c0_66, %c0_67] : memref<1x1x64xf32, #tpu.memory_space<vmem>>, vector<1x1x64xf32>
    %142 = vector.shape_cast %141 : vector<1x1x64xf32> to vector<1x64xf32>
    %143 = vector.broadcast %142 : vector<1x64xf32> to vector<8x64xf32>
    %144 = arith.addf %140, %143 : vector<8x64xf32>
    %cst_68 = arith.constant 5.000000e-01 : f32
    %145 = vector.broadcast %cst_68 : f32 to vector<8x64xf32>
    %146 = arith.mulf %145, %144 : vector<8x64xf32>
    %cst_69 = arith.constant 0.707106769 : f32
    %147 = vector.broadcast %cst_69 : f32 to vector<8x64xf32>
    %148 = arith.mulf %144, %147 : vector<8x64xf32>
    %149 = math.erf %148 : vector<8x64xf32>
    %cst_70 = arith.constant 1.000000e+00 : f32
    %150 = vector.broadcast %cst_70 : f32 to vector<8x64xf32>
    %151 = arith.addf %150, %149 : vector<8x64xf32>
    %152 = arith.mulf %146, %151 : vector<8x64xf32>
    %153 = arith.truncf %152 : vector<8x64xf32> to vector<8x64xbf16>
    %c0_71 = arith.constant 0 : index
    %c0_72 = arith.constant 0 : index
    %c0_73 = arith.constant 0 : index
    %154 = vector.load %arg17[%c0_71, %c0_72, %c0_73] : memref<1x64x32xbf16, #tpu.memory_space<vmem>>, vector<1x64x32xbf16>
    %155 = vector.shape_cast %154 : vector<1x64x32xbf16> to vector<64x32xbf16>
    %cst_74 = arith.constant dense<0.000000e+00> : vector<8x32xf32>
    %156 = tpu.matmul %153, %155, %cst_74 {dimension_numbers = #tpu.dot_dimension_numbers<[1], [0], [0], [1], [0, 0, 1, 1], [], []>} : vector<8x64xbf16>, vector<64x32xbf16>, vector<8x32xf32> -> vector<8x32xf32>
    %c0_75 = arith.constant 0 : index
    %c0_76 = arith.constant 0 : index
    %c0_77 = arith.constant 0 : index
    %157 = vector.load %arg18[%c0_75, %c0_76, %c0_77] : memref<1x1x32xf32, #tpu.memory_space<vmem>>, vector<1x1x32xf32>
    %158 = vector.shape_cast %157 : vector<1x1x32xf32> to vector<1x32xf32>
    %159 = vector.broadcast %158 : vector<1x32xf32> to vector<8x32xf32>
    %160 = arith.addf %156, %159 : vector<8x32xf32>
    %161 = arith.addf %110, %160 : vector<8x32xf32>
    %162 = vector.shape_cast %161 : vector<8x32xf32> to vector<1x8x32xf32>
    %c0_78 = arith.constant 0 : index
    %c0_79 = arith.constant 0 : index
    %c0_80 = arith.constant 0 : index
    %163 = vector.load %arg19[%c0_78, %c0_79, %c0_80] : memref<1x8x32xf32, #tpu.memory_space<vmem>>, vector<1x8x32xf32>
    tpu.vector_store %arg19[%c0_78, %c0_79, %c0_80], %162 {strides = array<i32>} : memref<1x8x32xf32, #tpu.memory_space<vmem>>, vector<1x8x32xf32>,
    return
  }
  func.func @transform_0(%arg0: i32, %arg1: i32) -> (i32, i32, i32) {
    %c0_i32 = arith.constant 0 : i32
    %c0_i32_0 = arith.constant 0 : i32
    %c0_i32_1 = arith.constant 0 : i32
    return %arg0, %c0_i32, %c0_i32_0 : i32, i32, i32
  }
  func.func @transform_1(%arg0: i32, %arg1: i32) -> (i32, i32, i32) {
    %c0_i32 = arith.constant 0 : i32
    %c0_i32_0 = arith.constant 0 : i32
    %c0_i32_1 = arith.constant 0 : i32
    return %arg1, %c0_i32, %c0_i32_0 : i32, i32, i32
  }
  func.func @transform_2(%arg0: i32, %arg1: i32) -> (i32, i32, i32) {
    %c0_i32 = arith.constant 0 : i32
    %c0_i32_0 = arith.constant 0 : i32
    %c0_i32_1 = arith.constant 0 : i32
    return %arg1, %c0_i32, %c0_i32_0 : i32, i32, i32
  }
  func.func @transform_3(%arg0: i32, %arg1: i32) -> (i32, i32, i32) {
    %c0_i32 = arith.constant 0 : i32
    %c0_i32_0 = arith.constant 0 : i32
    %c0_i32_1 = arith.constant 0 : i32
    return %arg1, %c0_i32, %c0_i32_0 : i32, i32, i32
  }
  func.func @transform_4(%arg0: i32, %arg1: i32) -> (i32, i32, i32) {
    %c0_i32 = arith.constant 0 : i32
    %c0_i32_0 = arith.constant 0 : i32
    %c0_i32_1 = arith.constant 0 : i32
    return %arg1, %c0_i32, %c0_i32_0 : i32, i32, i32
  }
  func.func @transform_5(%arg0: i32, %arg1: i32) -> (i32, i32, i32) {
    %c0_i32 = arith.constant 0 : i32
    %c0_i32_0 = arith.constant 0 : i32
    %c0_i32_1 = arith.constant 0 : i32
    return %arg1, %c0_i32, %c0_i32_0 : i32, i32, i32
  }
  func.func @transform_6(%arg0: i32, %arg1: i32) -> (i32, i32, i32) {
    %c0_i32 = arith.constant 0 : i32
    %c0_i32_0 = arith.constant 0 : i32
    %c0_i32_1 = arith.constant 0 : i32
    return %arg1, %c0_i32, %c0_i32_0 : i32, i32, i32
  }
  func.func @transform_7(%arg0: i32, %arg1: i32) -> (i32, i32, i32) {
    %c0_i32 = arith.constant 0 : i32
    %c0_i32_0 = arith.constant 0 : i32
    %c0_i32_1 = arith.constant 0 : i32
    return %arg1, %c0_i32, %c0_i32_0 : i32, i32, i32
  }
  func.func @transform_8(%arg0: i32, %arg1: i32) -> (i32, i32, i32) {
    %c0_i32 = arith.constant 0 : i32
    %c0_i32_0 = arith.constant 0 : i32
    %c0_i32_1 = arith.constant 0 : i32
    return %arg1, %c0_i32, %c0_i32_0 : i32, i32, i32
  }
  func.func @transform_9(%arg0: i32, %arg1: i32) -> (i32, i32, i32) {
    %c0_i32 = arith.constant 0 : i32
    %c0_i32_0 = arith.constant 0 : i32
    %c0_i32_1 = arith.constant 0 : i32
    return %arg1, %c0_i32, %c0_i32_0 : i32, i32, i32
  }
  func.func @transform_10(%arg0: i32, %arg1: i32) -> (i32, i32, i32) {
    %c0_i32 = arith.constant 0 : i32
    %c0_i32_0 = arith.constant 0 : i32
    %c0_i32_1 = arith.constant 0 : i32
    return %arg1, %c0_i32, %c0_i32_0 : i32, i32, i32
  }
  func.func @transform_11(%arg0: i32, %arg1: i32) -> (i32, i32, i32) {
    %c0_i32 = arith.constant 0 : i32
    %c0_i32_0 = arith.constant 0 : i32
    %c0_i32_1 = arith.constant 0 : i32
    return %arg1, %c0_i32, %c0_i32_0 : i32, i32, i32
  }
  func.func @transform_12(%arg0: i32, %arg1: i32) -> (i32, i32, i32) {
    %c0_i32 = arith.constant 0 : i32
    %c0_i32_0 = arith.constant 0 : i32
    %c0_i32_1 = arith.constant 0 : i32
    return %arg1, %c0_i32, %c0_i32_0 : i32, i32, i32
  }
  func.func @transform_13(%arg0: i32, %arg1: i32) -> (i32, i32, i32) {
    %c0_i32 = arith.constant 0 : i32
    %c0_i32_0 = arith.constant 0 : i32
    %c0_i32_1 = arith.constant 0 : i32
    return %arg1, %c0_i32, %c0_i32_0 : i32, i32, i32
  }
  func.func @transform_14(%arg0: i32, %arg1: i32) -> (i32, i32, i32) {
    %c0_i32 = arith.constant 0 : i32
    %c0_i32_0 = arith.constant 0 : i32
    %c0_i32_1 = arith.constant 0 : i32
    return %arg1, %c0_i32, %c0_i32_0 : i32, i32, i32
  }
  func.func @transform_15(%arg0: i32, %arg1: i32) -> (i32, i32, i32) {
    %c0_i32 = arith.constant 0 : i32
    %c0_i32_0 = arith.constant 0 : i32
    %c0_i32_1 = arith.constant 0 : i32
    return %arg1, %c0_i32, %c0_i32_0 : i32, i32, i32
  }
  func.func @transform_16(%arg0: i32, %arg1: i32) -> (i32, i32, i32) {
    %c0_i32 = arith.constant 0 : i32
    %c0_i32_0 = arith.constant 0 : i32
    %c0_i32_1 = arith.constant 0 : i32
    return %arg1, %c0_i32, %c0_i32_0 : i32, i32, i32
  }
  func.func @transform_17(%arg0: i32, %arg1: i32) -> (i32, i32, i32) {
    %c0_i32 = arith.constant 0 : i32
    %c0_i32_0 = arith.constant 0 : i32
    %c0_i32_1 = arith.constant 0 : i32
    return %arg0, %c0_i32, %c0_i32_0 : i32, i32, i32
  }
}

</mosaic_0001>

<bundles_post_ra>
// kernel: tpu_custom_call.1
= control target key start
LH: loop header
LB: loop body
LE: loop exit
PB: predicated region body
PF: predicated region fallthrough
CT: control target
= control target key end

     0   :  { %s4134_s0 = inlined_call_operand.hbm [shape: f32[2,8,32], index: 0, kind: input, shape index: {}]   ;;  %s4135_s1 = inlined_call_operand.vmem [shape: f32[2,1,32], index: 1, kind: input, shape index: {}]   ;;  %s4136_s2 = inlined_call_operand.vmem [shape: f32[2,1,32], index: 2, kind: input, shape index: {}]   ;;  %s4137_s3 = inlined_call_operand.vmem [shape: bf16[2,32,32], index: 3, kind: input, shape index: {}]   ;;  %s4138_s4 = inlined_call_operand.vmem [shape: f32[2,1,32], index: 4, kind: input, shape index: {}]   ;;  %s4139_s5 = inlined_call_operand.vmem [shape: bf16[2,32,32], index: 5, kind: input, shape index: {}]   ;;  %s4140_s6 = inlined_call_operand.vmem [shape: f32[2,1,32], index: 6, kind: input, shape index: {}]   ;;  %s4141_s7 = inlined_call_operand.vmem [shape: bf16[2,32,32], index: 7, kind: input, shape index: {}]   ;;  %s4142_s8 = inlined_call_operand.vmem [shape: f32[2,1,32], index: 8, kind: input, shape index: {}]   ;;  %s4143_s9 = inlined_call_operand.hbm [shape: bf16[2,32,32], index: 9, kind: input, shape index: {}]   ;;  %s4144_s10 = inlined_call_operand.vmem [shape: f32[2,1,32], index: 10, kind: input, shape index: {}]   ;;  %s4145_s11 = inlined_call_operand.vmem [shape: f32[2,1,32], index: 11, kind: input, shape index: {}]   ;;  %s4146_s12 = inlined_call_operand.vmem [shape: f32[2,1,32], index: 12, kind: input, shape index: {}]   ;;  %s4147_s13 = inlined_call_operand.hbm [shape: bf16[2,32,64], index: 13, kind: input, shape index: {}]   ;;  %s4148_s14 = inlined_call_operand.vmem [shape: f32[2,1,64], index: 14, kind: input, shape index: {}]   ;;  %s4149_s15 = inlined_call_operand.vmem [shape: bf16[2,64,32], index: 15, kind: input, shape index: {}]   ;;  %s4150_s16 = inlined_call_operand.vmem [shape: f32[2,1,32], index: 16, kind: input, shape index: {}]   ;;  %s4151_s17 = inlined_call_operand.hbm [shape: f32[2,8,32], index: 17, kind: output, shape index: {}]  }
   0x1   :  { %4179 = sst [smem:[#allocation27_spill]] %s4134_s0 }
   0x2   :  { %4180 = sst [smem:[#allocation28_spill]] %s4135_s1 }
   0x3   :  { %4181 = sst [smem:[#allocation29_spill]] %s4137_s3 }
   0x4   :  { %4182 = sst [smem:[#allocation30_spill]] %s4138_s4 }
   0x5   :  { %4183 = sst [smem:[#allocation31_spill]] %s4139_s5 }
   0x6   :  { %4184 = sst [smem:[#allocation32_spill]] %s4140_s6 }
   0x7   :  { %4185 = sst [smem:[#allocation33_spill]] %s4141_s7 }
   0x8   :  { %4186 = sst [smem:[#allocation34_spill]] %s4142_s8 }
   0x9   :  { %4187 = sst [smem:[#allocation35_spill]] %s4143_s9 }
   0xa   :  { %4188 = sst [smem:[#allocation36_spill]] %s4144_s10 }
   0xb   :  { %4189 = sst [smem:[#allocation37_spill]] %s4145_s11 }
   0xc   :  { %4190 = sst [smem:[#allocation38_spill]] %s4146_s12 }
   0xd   :  { %4191 = sst [smem:[#allocation39_spill]] %s4147_s13 }
   0xe   :  { %4192 = sst [smem:[#allocation40_spill]] %s4148_s14 }
   0xf   :  { %4193 = sst [smem:[#allocation41_spill]] %s4149_s15 }
  0x10   :  { %4194 = sst [smem:[#allocation42_spill]] %s4150_s16 }
  0x11   :  { %4195 = sst [smem:[#allocation43_spill]] %s4151_s17 }
  0x12   :  { %22 = vsyncpa [#allocation3], 0 }
  0x13   :  { %24 = vsyncpa [#allocation3 + $0x1], 0 }
  0x14   :  { %25 = vsyncpa [#allocation6], 0 }
  0x15   :  { %27 = vsyncpa [#allocation6 + $0x1], 0 }
  0x16   :  { %28 = vsyncpa [#allocation4], 0 }
  0x17   :  { %30 = vsyncpa [#allocation4 + $0x1], 0  ;;  %s3407_s24 = smov 0   ;;  %s3409_s25 = smov 0  }
  0x18   :  { %s3411_s26 = smov 0   ;;  %s3413_s27 = smov 0  }
  0x19   :  { %s3415_s28 = smov 0   ;;  %s3417_s29 = smov 0  }
  0x1a   :  { %s3419_s0 = smov 0   ;;  %s3421_s30 = smov 0  }
  0x1b   :  { %s3423_s18 = smov 0   ;;  %s3425_s19 = smov 0  }
  0x1c   :  { %s3427_s1 = smov 0  }
  0x1d LB: > { %4196 = sst [smem:[#allocation12_spill]] %s3263_s25  ;;  %s45_s20 = sadd.s32 1, %s3291_s18  ;;  %s3299_s1 = sphi %s3427_s1, %s36_s1   ;;  %s3295_s19 = sphi %s3425_s19, %s4280_s19   ;;  %s3291_s18 = sphi %s3423_s18, %s4279_s18   ;;  %s3287_s30 = sphi %s3421_s30, %s4278_s30   ;;  %s3283_s0 = sphi %s3419_s0, %s4277_s0   ;;  %s3279_s29 = sphi %s3417_s29, %s4276_s29   ;;  %s3275_s28 = sphi %s3415_s28, %s4275_s28   ;;  %s3271_s27 = sphi %s3413_s27, %s4274_s27   ;;  %s3267_s26 = sphi %s3411_s26, %s4273_s26   ;;  %s3263_s25 = sphi %s3409_s25, %s4272_s25   ;;  %s3259_s24 = sphi %s3407_s24, %s4271_s24  }
  0x1e   : > { %4197 = sst [smem:[#allocation13_spill]] %s3267_s26  ;;  %p4158_p0 = scmp.eq.s32.totalorder %s3299_s1, 0 }
  0x1f   : > { %4198 = sst [smem:[#allocation14_spill]] %s3271_s27  ;;  %p3464_p1 = scmp.ge.s32.totalorder %s45_s20, 2 }
  0x20   : > { %4199 = sst [smem:[#allocation15_spill]] %s3275_s28  ;;  %s289_s22 = sadd.s32 1, %s3267_s26 }
  0x21   : > { %4200 = sst [smem:[#allocation16_spill]] %s3279_s29  ;;  %p296_p2 = scmp.ne.s32.totalorder %s3267_s26, %s3263_s25 }
  0x22   : > { %4201 = sst [smem:[#allocation17_spill]] %s3287_s30  ;;  %s4282_s20 = smov (%p3464_p1, %s45_s20), 0 }
  0x23   : > { %4202 = sst [smem:[#allocation18_spill]] %s3291_s18  ;;  %p298_p3 = por %p296_p2, %p4158_p0 }
  0x24   : > { %4203 = sst [smem:[#allocation19_spill]] %s3295_s19  ;;  %s286_s23 = ssub.s32 %s3291_s18, %s4282_s20 }
  0x25   : > { %4204 = sst [smem:[#allocation20_spill]] %s3299_s1  ;;  %p4157_p4 = scmp.lt.s32.totalorder %s3299_s1, 4 }
  0x26   : > { %4206 = sst [smem:[#allocation21_spill]] %s4282_s20  ;;  %p287_p5 = scmp.eq.s32.totalorder %s286_s23, 0 }
  0x27   : > { %s606_s17 = sand.u32 1, %s3299_s1   ;;  %s608_s30 = sand.u32 1, %s3267_s26  }
  0x28   : > { %s3483_s16 = scalar_select %p287_p5, %s3267_s26, %s289_s22  }
  0x29   : > { %s3485_s15 = sshll.u32 %s608_s30, 4  ;;  %s4155_s14 = sshll.u32 %s3291_s18, 8 }
  0x2a   : > { %4207 = sst [smem:[#allocation22_spill]] %s3483_s16  ;;  %s610_s20 = scalar_lea.vmem [#allocation5], %s3485_s15 }
  0x2b   : > { %s4208_s9 = sld [smem:[#allocation35_spill]]  ;;  %s617_s23 = sshll.u32 %s610_s20, 4  ;;  %s3502_s23 = int_to_ptr.vmem [resolvable:$true] %s617_s23 }
  0x2c   : > { %p3498_p6 = pnand %p4157_p4, %p298_p3  ;;  %s3504_s30 = scalar_lea.sflag [#allocation6], %s606_s17 }
  0x2e   : > { %p4159_p8 = pneg %p3498_p6 }
  0x31   : > { %s3493_s10 = scalar_lea.hbm %s4208_s9, %s4155_s14  ;;  %s3088_s14 = scalar_lea.hbm %s4208_s9, 512 }
  0x32   : > { %s3083_s11 = scalar_lea.hbm %s3493_s10, 256  ;;  %p3089_p11 = scmp.lt.u32.totalorder %s3493_s10, %s4208_s9 }
  0x33   : > { %p3084_p7 = scmp.ne.s32.totalorder %s3493_s10, %s3083_s11  ;;  %p3090_p12 = scmp.lt.u32.totalorder %s3088_s14, %s3083_s11 }
  0x34   : > { %p3092_p2 = scmp.lt.u32.totalorder %s3083_s11, %s3493_s10 }
  0x35   : > { %p3086_p9 = pnand %p4159_p8, %p3084_p7  ;;  %p3091_p13 = por %p3090_p12, %p3089_p11 }
  0x37   : > { %p3087_p10 = pneg %p3086_p9  ;;  %p3093_p3 = por %p3092_p2, %p3091_p13 }
  0x39   : > { %p3094_p5 = pnand %p3093_p3, %p3087_p10 }
  0x3b   : > { %3097 = shalt.err (!%p3094_p5)
}
  0x3c   : > { %s3098_s17 = scalar_lea.vmem %s3502_s23, 256  ;;  %s3301_s12 = smov [#allocation5]  }
  0x3d   : > { %p3099_p7 = scmp.ne.s32.totalorder %s3502_s23, %s3098_s17  ;;  %s3103_s20 = sshll.u32 %s3301_s12, 4  ;;  %s3104_s20 = int_to_ptr.vmem [resolvable:$false] %s3103_s20 }
  0x3e   : > { %s3105_s16 = scalar_lea.vmem %s3104_s20, 512  ;;  %p3106_p0 = scmp.lt.s32.totalorder %s3502_s23, %s3104_s20 }
  0x3f   : > { %p3101_p9 = pnand %p3099_p7, %p4159_p8  ;;  %p3107_p11 = scmp.lt.s32.totalorder %s3105_s16, %s3098_s17 }
  0x41   : > { %p3102_p4 = pneg %p3101_p9  ;;  %p3108_p12 = por %p3107_p11, %p3106_p0 }
  0x43   : > { %p3109_p13 = pnand %p3108_p12, %p3102_p4 }
  0x45   : > { %3112 = shalt.err (!%p3109_p13)
}
  0x46   : > { %s4160_s14 = smov 64   ;;  %s4161_s26 = smov 4  }
  0x47   : > { %2929 = dma.hbm_to_vmem [thread:$0]  (!%p3498_p6), %s3493_s10, 256, %s3502_s23, %s3504_s30, %s4160_s14, %s4160_s14, %s4161_s26  }
  0x48   : > { %p302_p0 = scmp.ne.s32.totalorder %s3263_s25, %s3259_s24  ;;  %s4210_s11 = sshll.u32 %s3291_s18, 8 }
  0x49   : > { %s4211_s13 = sld [smem:[#allocation39_spill]]  ;;  %p2709_p4 = scmp.ge.s32.totalorder %s3299_s1, 1 }
  0x4a   : > { %s649_s16 = scalar_lea.vmem [#allocation7], %s3485_s15  ;;  %p684_p10 = scmp.lt.s32.totalorder %s3299_s1, 5 }
  0x4b   : > { %s656_s9 = sshll.u32 %s649_s16, 4  ;;  %s3552_s10 = sadd.s32 4294967295, %s3299_s1   ;;  %s3619_s9 = int_to_ptr.vmem [resolvable:$true] %s656_s9 }
  0x4c   : > { %p3547_p2 = pnand %p2709_p4, %p684_p10  ;;  %s2698_s23 = sadd.s32 4294967294, %s3299_s1  }
  0x4d   : > { %s55_s15 = sadd.s32 1, %s3279_s29  ;;  %p62_p3 = scmp.ne.s32.totalorder %s3279_s29, %s3275_s28 }
  0x4e   : > { %s4212_s8 = scalar_select %p3547_p2, 1, 0 }
  0x4f   : > { %s3542_s20 = scalar_lea.hbm %s4211_s13, %s4210_s11  ;;  %s48_s11 = sadd.s32 1, %s3295_s19 }
  0x50   : > { %s4284_s11 = smov (!%p3464_p1, %s48_s11), %s3295_s19  ;;  %p68_p7 = scmp.ne.s32.totalorder %s3275_s28, %s3271_s27 }
  0x51   : > { %p50_p5 = scmp.ge.s32.totalorder %s4284_s11, 2  ;;  %p4213_p9 = scmp.eq.s32.totalorder %s3299_s1, 0 }
  0x52   : > { %p69_p12 = scmp.eq.s32.totalorder %s3552_s10, 0  ;;  %p508_p4 = scmp.eq.s32.totalorder %s3552_s10, 3 }
  0x53   : > { %p3566_p11 = por %p4213_p9, %p62_p3  ;;  %s4286_s11 = smov (%p50_p5, %s4284_s11), 0 }
  0x54   : > { %4215 = sst [smem:[#allocation23_spill]] %s4286_s11  ;;  %p3576_p1 = por %p69_p12, %p68_p7 }
  0x55   : > { %p3583_p13 = por %p302_p0, %p69_p12  ;;  %s52_s16 = ssub.s32 %s3295_s19, %s4286_s11 }
  0x56   : > { %s4216_s21 = scalar_select %p3576_p1, 1, 0 }
  0x57   : > { %s4217_s12 = scalar_select %p3583_p13, 1, 0 }
  0x58   : > { %p53_p10 = scmp.eq.s32.totalorder %s52_s16, 0  ;;  %p514_p9 = scmp.eq.s32.totalorder %s2698_s23, 3 }
  0x59   : > { %p3590_p8 = por %p508_p4, %p62_p3  ;;  %s534_s26 = sand.u32 1, %s3279_s29  }
  0x5a   : > { %s3596_s18 = scalar_select %p53_p10, %s3279_s29, %s55_s15  }
  0x5b   : > { %s4218_s14 = scalar_select %p3590_p8, 1, 0 }
  0x5c   : > { %4220 = sst [smem:[#allocation25_spill]] %s3596_s18  ;;  %p3601_p5 = por %p514_p9, %p68_p7 }
  0x5d   : > { %4219 = sst [smem:[#allocation24_spill]] %s4218_s14  ;;  %s2701_s24 = sshll.u32 %s534_s26, 3 }
  0x5e   : > { %s4221_s7 = scalar_select %p3601_p5, 1, 0 }
  0x5f   : > { %s2702_s6 = sshll.u32 %s3295_s19, 7  ;;  %s4223_s11 = sld [smem:[#allocation27_spill]] }
  0x60   : > { %4222 = sst [smem:[#allocation26_spill]] %s4221_s7  ;;  %s538_s23 = scalar_lea.vmem [#allocation2], %s2701_s24 }
  0x61   : > { %s545_s16 = sshll.u32 %s538_s23, 4  ;;  %p4224_p0 = scmp.lt.s32.totalorder %s3299_s1, 4  ;;  %s3621_s16 = int_to_ptr.vmem [resolvable:$true] %s545_s16 }
  0x62   : > { %s535_s3 = scalar_lea.sflag [#allocation3], %s534_s26 }
  0x63   : > { %p3615_p3 = pnand %p4224_p0, %p3566_p11 }
  0x65   : > { %s3609_s4 = scalar_lea.hbm %s4223_s11, %s2702_s6  ;;  %p3115_p12 = pneg %p3615_p3 }
  0x66   : > { %s3113_s5 = scalar_lea.hbm %s3609_s4, 128  ;;  %s3118_s24 = scalar_lea.hbm %s4223_s11, 256 }
  0x67   : > { %p3114_p7 = scmp.ne.s32.totalorder %s3609_s4, %s3113_s5  ;;  %p3119_p11 = scmp.lt.u32.totalorder %s3609_s4, %s4223_s11 }
  0x68   : > { %p3120_p9 = scmp.lt.u32.totalorder %s3118_s24, %s3113_s5  ;;  %p3122_p5 = scmp.lt.u32.totalorder %s3113_s5, %s3609_s4 }
  0x69   : > { %p3116_p4 = pnand %p3115_p12, %p3114_p7 }
  0x6a   : > { %p3121_p0 = por %p3120_p9, %p3119_p11 }
  0x6b   : > { %p3117_p10 = pneg %p3116_p4 }
  0x6c   : > { %p3123_p8 = por %p3122_p5, %p3121_p0 }
  0x6e   : > { %p3124_p13 = pnand %p3123_p8, %p3117_p10 }
  0x70   : > { %3127 = shalt.err (!%p3124_p13)
}
  0x71   : > { %s3128_s26 = scalar_lea.vmem %s3621_s16, 128  ;;  %s3304_s6 = smov [#allocation2]  }
  0x72   : > { %p3129_p7 = scmp.ne.s32.totalorder %s3621_s16, %s3128_s26  ;;  %s3133_s17 = sshll.u32 %s3304_s6, 4  ;;  %s3134_s17 = int_to_ptr.vmem [resolvable:$false] %s3133_s17 }
  0x73   : > { %s3135_s19 = scalar_lea.vmem %s3134_s17, 256  ;;  %p3136_p2 = scmp.lt.s32.totalorder %s3621_s16, %s3134_s17 }
  0x74   : > { %p3131_p4 = pnand %p3129_p7, %p3115_p12  ;;  %p3137_p11 = scmp.lt.s32.totalorder %s3135_s19, %s3128_s26 }
  0x76   : > { %p3132_p1 = pneg %p3131_p4  ;;  %p3138_p9 = por %p3137_p11, %p3136_p2 }
  0x78   : > { %p3139_p5 = pnand %p3138_p9, %p3132_p1 }
  0x7a   : > { %3142 = shalt.err (!%p3139_p5)
}
  0x7b   : > { %2926 = dma.hbm_to_vmem [thread:$0]  (!%p3615_p3), %s3609_s4, 128, %s3621_s16, %s535_s3  }
  0x7c   : > { %s3143_s5 = scalar_lea.hbm %s3542_s20, 256  ;;  %p4226_p13 = pneg %p3498_p6 }
  0x7d   : > { %p3144_p8 = scmp.ne.s32.totalorder %s3542_s20, %s3143_s5  ;;  %s3148_s26 = scalar_lea.hbm %s4211_s13, 512 }
  0x7e   : > { %p3149_p2 = scmp.lt.u32.totalorder %s3542_s20, %s4211_s13  ;;  %p3150_p1 = scmp.lt.u32.totalorder %s3148_s26, %s3143_s5 }
  0x7f   : > { %p3146_p12 = pnand %p3144_p8, %p4226_p13  ;;  %p3152_p7 = scmp.lt.u32.totalorder %s3143_s5, %s3542_s20 }
  0x80   : > { %p3151_p0 = por %p3150_p1, %p3149_p2 }
  0x81   : > { %p3147_p10 = pneg %p3146_p12 }
  0x82   : > { %p3153_p4 = por %p3152_p7, %p3151_p0 }
  0x84   : > { %p3154_p11 = pnand %p3153_p4, %p3147_p10 }
  0x86   : > { %3157 = shalt.err (!%p3154_p11)
}
  0x87   : > { %s3158_s4 = scalar_lea.vmem %s3619_s9, 256  ;;  %p4227_p9 = pmov %p4226_p13 }
  0x88   : > { %p3159_p3 = scmp.ne.s32.totalorder %s3619_s9, %s3158_s4  ;;  %s3305_s16 = smov [#allocation7]  }
  0x89   : > { %s3163_s3 = sshll.u32 %s3305_s16, 4  ;;  %s3164_s3 = int_to_ptr.vmem [resolvable:$false] %s3163_s3 }
  0x8a   : > { %p3161_p5 = pnand %p3159_p3, %p4227_p9  ;;  %s3165_s17 = scalar_lea.vmem %s3164_s3, 512 }
  0x8b   : > { %p3166_p13 = scmp.lt.s32.totalorder %s3619_s9, %s3164_s3  ;;  %p3167_p12 = scmp.lt.s32.totalorder %s3165_s17, %s3158_s4 }
  0x8c   : > { %p3162_p8 = pneg %p3161_p5 }
  0x8d   : > { %p3168_p2 = por %p3167_p12, %p3166_p13 }
  0x8f   : > { %p3169_p1 = pnand %p3168_p2, %p3162_p8 }
  0x91   : > { %3172 = shalt.err (!%p3169_p1)
}
  0x92   : > { %s4228_s19 = smov 4   ;;  %s4229_s5 = smov 64  }
  0x93   : > { %2932 = dma.hbm_to_vmem [thread:$0]  (!%p3498_p6), %s3542_s20, 256, %s3619_s9, %s3504_s30, %s4229_s5, %s4229_s5, %s4228_s19  }
  0x94   : > { %p4230_p10 = scmp.ne.s32.totalorder %s4212_s8, 0 }
  0x95   : > { %s3678_s24 = sand.u32 (!%p4230_p10), 1, %s3275_s28   ;;  %p4231_p0 = scmp.ne.s32.totalorder (!%p4230_p10), %s4216_s21, 0 }
  0x96   : > { %688 = sbr.rel (%p4230_p10) target bundleno = 2664 (0xa68), region = 88  ;;  %s4168_s23 = sshll.u32 (!%p4230_p10), %s3678_s24, 3 }
  0x97   : > { %s691_s26 = scalar_lea.sflag (!%p4230_p10), [#allocation3], %s3678_s24  ;;  %s3684_s22 = scalar_lea.vmem (!%p4230_p10), [#allocation2], %s4168_s23 }
  0x9d   : > { %3246 = dma.done.wait (%p4231_p0), %s691_s26, 128  }
  0x9e   : > { %3248 = vsyncadd (%p4231_p0), %s691_s26, 4294967168  ;;  %s699_s8 = sand.u32 1, %s3552_s10   ;;  %s701_s9 = sand.u32 1, %s3263_s25  }
  0x9f   : > { %s3692_s30 = sshll.u32 %s701_s9, 4  ;;  %s700_s20 = scalar_lea.sflag [#allocation6], %s699_s8 }
  0xa0   : > { %p4232_p6 = scmp.ne.s32.totalorder %s4217_s12, 0 }
  0xa2   : > { %3250 = dma.done.wait (%p4232_p6), %s700_s20, 512  }
  0xa3   : > { %3252 = vsyncadd (%p4232_p6), %s700_s20, 4294966784  ;;  %p823_p7 = scmp.lt.s32.totalorder %s3283_s0, 1  ;;  %s4235_s4 = sld [smem:[#allocation29_spill]] }
  0xa4   : > { %s4236_s13 = sld [smem:[#allocation31_spill]]  ;;  %s4238_s28 = sld [smem:[#allocation33_spill]] }
  0xa5   : > { %s3701_s21 = scalar_select %p823_p7, %s3283_s0, 1 }
  0xa6   : > { %s4239_s8 = sld [smem:[#allocation34_spill]]  ;;  %s4241_s23 = sld [smem:[#allocation37_spill]] }
  0xa7   : > { %s2775_s19 = sshll.u32 %s3701_s21, 4  ;;  %s4242_s16 = sld [smem:[#allocation38_spill]] }
  0xa8   : > { %s4244_s26 = sld [smem:[#allocation41_spill]]  ;;  %s712_s11 = scalar_lea.vmem [#allocation7], %s3692_s30 }
  0xa9   : > { %s3719_s6 = scalar_lea.vmem %s4235_s4, %s2775_s19  ;;  %s4245_s4 = sld [smem:[#allocation42_spill]] }
  0xaa   : > { %s3724_s10 = scalar_lea.vmem %s4236_s13, %s2775_s19  ;;  %s3733_s25 = scalar_lea.vmem %s4238_s28, %s2775_s19 }
  0xab   : > { %s4243_s28 = sld [smem:[#allocation40_spill]]  ;;  %s2778_s19 = sshll.u32 %s3701_s21, 5 }
  0xac   : > { %s852_s20 = scalar_lea.vmem %s4239_s8, %s3701_s21  ;;  %s858_s27 = scalar_lea.vmem %s4241_s23, %s3701_s21 }
  0xad   : > { %s861_s3 = scalar_lea.vmem %s4242_s16, %s3701_s21  ;;  %s4246_s13 = sshll.u32 %s3678_s24, 3 }
  0xae   : > { %s3759_s8 = scalar_lea.vmem %s4244_s26, %s2778_s19  ;;  %s3768_s23 = scalar_lea.vmem [#allocation8], %s4246_s13 }
  0xaf   : > { %s872_s7 = scalar_lea.vmem %s4245_s4, %s3701_s21  ;;  %p2722_p4 = scmp.ne.s32.totalorder %s3283_s0, 0 }
  0xb0   : > { %v878_v0 = vld [vmem:[%s3684_s22] sm:$0xff] (!%p2722_p4)  ;;  %vm879_vm0 = vcmask (!%p2722_p4), 261120  }
  0xb1   : > { %s864_s18 = scalar_lea.vmem %s4243_s28, %s3701_s21  ;;  %877 = sbr.rel (%p2722_p4) target bundleno = 184 (0xb8), region = 104  ;;  %880 = vst.msk [vmem:[%s3768_s23] sm:$0xff] (!%p2722_p4), %vm879_vm0, %v878_v0 }
  0xb8 PF: > { %v3774_v1 = vld [vmem:[%s3768_s23] sm:$0xff]  ;;  %vm884_vm1 = vcmask 261120   ;;  %v3039_v8 = vld [vmem:[%s3719_s6] sm:$0xff]   ;;  %v3306_v10 = vmov 0.0   ;;  %v3041_v11 = vld [vmem:[%s3719_s6 + $0x8] sm:$0xff]   ;;  %vm3307_vm2 = vmmov 0   ;;  %v1121_v43 = vlaneseq }
  0xb9   : > { %v885_v2 = vsel %vm884_vm1, %v3774_v1, 0.0  ;;  %v3040_v9 = vld [vmem:[%s3724_s10] sm:$0xff]   ;;  %2815 = vmatprep.subr.bf16.mxu0 %v3306_v10  ;;  %2823 = vmatprep.subr.bf16.mxu1 %v3306_v10  ;;  %v3042_v12 = vld [vmem:[%s3724_s10 + $0x8] sm:$0xff]   ;;  %s4247_s14 = sld [smem:[#allocation28_spill]]  ;;  %s4249_s10 = scalar_lea.vmem %s4136_s2, %s3701_s21  ;;  %v3311_v41 = vmov 1983009808  }
  0xba   : > { %886 = vadd.xlane.f32.xlu0 %v885_v2  ;;  %2816 = vmatpush3.bf16.msra.mxu0 %v3039_v8  ;;  %v2724_v19 = vld [vmem:[%s4249_s10] ss:$0 sm:$0xff]  ;;  %v3044_v24 = vld [vmem:[%s3733_s25 + $0x8] sm:$0xff]   ;;  %s3308_s28 = smov 104   ;;  %s3309_s19 = smov 120   ;;  %v1119_v42 = vunpack.c.l.s4 %v3311_v41  ;;  %v3836_v47 = vshrl.u32 %v1121_v43, 7 }
  0xbb   : > { %2824 = vmatpush3.bf16.msra.mxu1 %v3040_v9  ;;  %2817 = vmatprep.subr.bf16.mxu0 %v3306_v10  ;;  %v3043_v22 = vld [vmem:[%s3733_s25] sm:$0xff]   ;;  %s4250_s25 = sld [smem:[#allocation32_spill]]  ;;  %s4252_s15 = sld [smem:[#allocation30_spill]]  ;;  %v3312_v44 = vmov 1934713408   ;;  %vm1556_vm3 = vcmask 64512  }
  0xbc   : > { %2825 = vmatprep.subr.bf16.mxu1 %v3306_v10  ;;  %2819 = vmatprep.mubr.msk.bf16.mxu0 %vm3307_vm2, %v3306_v10  ;;  %s3310_s4 = smov 112   ;;  %v1151_v45 = vunpack.c.l.s4 %v3312_v44  ;;  %v1120_v46 = vunpack.c.0.s8 %v1119_v42  ;;  %vm1819_vm5 = vcmask 1043456   ;;  %s3314_s6 = smov 8   ;;  %vm2162_vm6 = vcmask 130048  }
  0xbd   : > { %2827 = vmatprep.mubr.msk.bf16.mxu1 %vm3307_vm2, %v3306_v10  ;;  %s3315_s17 = smov 24   ;;  %vm2164_vm7 = vcmask 195584   ;;  %s4257_s16 = sld [smem:[#allocation36_spill]]  ;;  %vm2375_vm8 = vcmask 523264  }
  0xbe   : > { %2818 = vmatpush3.bf16.msra.mxu0 %v3041_v11  ;;  %v1152_v50 = vunpack.c.0.s8 %v1151_v45  ;;  %v3839_v51 = vsub.s32 %v1120_v46, %v3836_v47  ;;  %s2435_s0 = sshll.u32 %s3768_s23, 4  ;;  %s4071_s0 = int_to_ptr.vmem [resolvable:$true] %s2435_s0 }
  0xbf   : > { %2826 = vmatpush3.bf16.msra.mxu1 %v3042_v12  ;;  %2831 = vmatprep.subr.bf16.mxu0 %v3306_v10  ;;  %s4248_s22 = scalar_lea.vmem %s4247_s14, %s3701_s21 }
  0xc0   : > { %2839 = vmatprep.subr.bf16.mxu1 %v3306_v10  ;;  %v2723_v17 = vld [vmem:[%s4248_s22] ss:$0 sm:$0xff]  ;;  %v3842_v57 = vsub.s32 %v1152_v50, %v3836_v47  ;;  %s3313_s22 = smov 16  }
  0xc1   : > { %s4251_s29 = scalar_lea.vmem %s4250_s25, %s3701_s21  ;;  %s4253_s9 = scalar_lea.vmem %s4252_s15, %s3701_s21 }
  0xc2   : > { %v2729_v25 = vld [vmem:[%s4251_s29] ss:$0 sm:$0xff]  ;;  %s4262_s15 = sld [smem:[#allocation17_spill]] }
  0xc3   : > { %v2725_v35 = vld [vmem:[%s4253_s9] ss:$0 sm:$0xff]  ;;  %s4258_s25 = scalar_lea.vmem %s4257_s16, %s3701_s21  ;;  %s3173_s21 = scalar_lea.vmem %s4071_s0, 128 }
  0xc4   : > { %p3174_p11 = scmp.ne.s32.totalorder %s4071_s0, %s3173_s21 }
  0xc8   : > { %s2770_s13 = sshll.u32 %s4262_s15, 7 }
 0x147   : > { %v887_v3 = vpop.xlane.xlu0 %886 }
 0x148   : > { %v889_v4 = vmul.f32 0.03125, %v887_v3 }
 0x14a   : > { %v890_v5 = vsub.f32 %v3774_v1, %v889_v4 }
 0x14c   : > { %v891_v6 = vmul.f32 %v890_v5, %v890_v5 }
 0x14e   : > { %v892_v7 = vsel %vm884_vm1, %v891_v6, 0.0 }
 0x14f   : > { %893 = vadd.xlane.f32.xlu0 %v892_v7 }
 0x1dc   : > { %v894_v13 = vpop.xlane.xlu0 %893 }
 0x1dd   : > { %v895_v14 = vmul.f32 0.03125, %v894_v13 }
 0x1df   : > { %v896_v15 = vadd.f32 1e-05, %v895_v14 }
 0x1e1   : > { %3053 = vrsqrt.f32 %v896_v15 }
 0x1eb   : > { %v3054_v16 = vpop.eup %3053 }
 0x1ec   : > { %v898_v18 = vmul.f32 %v3054_v16, %v890_v5 }
 0x1ee   : > { %v905_v20 = vmul.f32 %v2723_v17, %v898_v18 }
 0x1f0   : > { %v912_v21 = vadd.f32 %v2724_v19, %v905_v20 }
 0x1f2   : > { %v913_v23 = vpack.c.bf16 %v912_v21, %v912_v21 }
 0x1f4   : > { %2820 = vmatmul.mubr.msk.bf16.vlgmr.msra.gmra.mrb[0].mxu0 %vm884_vm1, %v913_v23  ;;  %2828 = vmatmul.mubr.msk.bf16.vlgmr.msra.gmra.mrb[0].mxu1 %vm884_vm1, %v913_v23 }
 0x1f5   : > { %2832 = vmatpush3.bf16.msra.mxu0 %v3043_v22  ;;  %2835 = vmatprep.mubr.msk.bf16.mxu0 %vm3307_vm2, %v3306_v10 }
 0x1f6   : > { %2833 = vmatprep.subr.bf16.mxu0 %v3306_v10  ;;  %2841 = vmatprep.mubr.msk.bf16.mxu1 %vm3307_vm2, %v3306_v10 }
 0x1f9   : > { %2834 = vmatpush3.bf16.msra.mxu0 %v3044_v24 }
 0x1fa   : > { %2845 = vmatprep.subr.bf16.mxu0 %v3306_v10 }
 0x1fc   : > { %2836 = vmatmul.mubr.msk.bf16.vlgmr.msra.gmra.mrb[4].mxu0 %vm884_vm1, %v913_v23 }
 0x1fd   : > { %2847 = vmatprep.mubr.msk.bf16.mxu0 %vm3307_vm2, %v3306_v10 }
 0x2c7   : > { %v974_v26 = vpop.f32.mrb[0].mxu0  ;;  %v1037_v27 = vpop.f32.mrb[0].mxu1 }
 0x2c8   : > { %v1038_v28 = vadd.f32 %v2729_v25, %v1037_v27  ;;  %v2821_v29 = vpop.f32.mrb[1].mxu0  ;;  %v2829_v30 = vpop.f32.mrb[1].mxu1  ;;  %v975_v37 = vadd.f32 %v2725_v35, %v974_v26 }
 0x2c9   : > { %v977_v31 = vpop.f32.mrb[2].mxu0  ;;  %v1040_v32 = vpop.f32.mrb[2].mxu1 }
 0x2ca   : > { %1263 = vrot.lane.b32.xlu0 %v1038_v28, %s3308_s28  ;;  %1257 = vrot.lane.b32.xlu1 %v1038_v28, %s3309_s19  ;;  %v2822_v33 = vpop.f32.mrb[3].mxu0  ;;  %v2830_v34 = vpop.f32.mrb[3].mxu1 }
 0x2ce   : > { %1260 = vrot.lane.b32.xlu1 %v1038_v28, %s3310_s4 }
 0x2cf   : > { %v3830_v36 = vpop.f32.mrb[4].mxu0 }
 0x2d0   : > { %v2837_v38 = vpop.f32.mrb[5].mxu0 }
 0x2d1   : > { %v1103_v39 = vpop.f32.mrb[6].mxu0 }
 0x2d2   : > { %1107 = vrot.lane.b32.xlu1 %v975_v37, %s3309_s19  ;;  %v2838_v40 = vpop.f32.mrb[7].mxu0 }
 0x2d6   : > { %1110 = vrot.lane.b32.xlu1 %v975_v37, %s3310_s4 }
 0x2da   : > { %1113 = vrot.lane.b32.xlu1 %v975_v37, %s3308_s28 }
 0x33c   : > { %v1264_v48 = vpop.permute.xlu0 %1263  ;;  %v1258_v49 = vpop.permute.xlu1 %1257 }
 0x33d   : > { %v1282_v52 = vcombine.low %v1258_v49, %v1264_v48  ;;  %v1283_v53 = vcombine.high %v1258_v49, %v1264_v48 }
 0x33f   : > { %v1290_v58 = vrot.slane %v1282_v52, %v3839_v51  ;;  %v1297_v59 = vrot.slane %v1283_v53, %v3839_v51 }
 0x340   : > { %v1261_v54 = vpop.permute.xlu1 %1260 }
 0x341   : > { %v1266_v55 = vcombine.low %v1038_v28, %v1261_v54  ;;  %v1267_v56 = vcombine.high %v1038_v28, %v1261_v54 }
 0x343   : > { %v1274_v60 = vrot.slane %v1266_v55, %v3839_v51  ;;  %v1281_v61 = vrot.slane %v1267_v56, %v3839_v51 }
 0x344   : > { %v1108_v62 = vpop.permute.xlu1 %1107 }
 0x345   : > { %v1298_v63 = vcombine.low %v1274_v60, %v1290_v58  ;;  %v1299_v0 = vcombine.high %v1274_v60, %v1290_v58  ;;  %v1314_v2 = vcombine.low %v1281_v61, %v1297_v59  ;;  %v1315_v3 = vcombine.high %v1281_v61, %v1297_v59 }
 0x347   : > { %v1306_v4 = vrot.slane %v1298_v63, %v3842_v57  ;;  %v1313_v5 = vrot.slane %v1299_v0, %v3842_v57  ;;  %v1322_v6 = vrot.slane %v1314_v2, %v3842_v57  ;;  %v1329_v7 = vrot.slane %v1315_v3, %v3842_v57 }
 0x348   : > { %v1111_v8 = vpop.permute.xlu1 %1110 }
 0x349   : > { %v1334_v9 = vcombine.low %v1306_v4, %v1313_v5  ;;  %v2739_v11 = vcombine.high %v1306_v4, %v1313_v5  ;;  %v1350_v12 = vcombine.low %v1322_v6, %v1329_v7  ;;  %v2740_v13 = vcombine.high %v1322_v6, %v1329_v7 }
 0x34a   : > { %v1116_v14 = vcombine.low %v975_v37, %v1111_v8  ;;  %v1117_v15 = vcombine.high %v975_v37, %v1111_v8 }
 0x34b   : > { %v1341_v16 = vrot.slane %v1334_v9, %v3839_v51  ;;  %v1349_v17 = vrot.slane %v2739_v11, %v3839_v51  ;;  %v1357_v18 = vrot.slane %v1350_v12, %v3839_v51  ;;  %v1365_v19 = vrot.slane %v2740_v13, %v3839_v51 }
 0x34c   : > { %v1114_v20 = vpop.permute.xlu1 %1113  ;;  %v1124_v25 = vrot.slane %v1116_v14, %v3839_v51  ;;  %v1131_v26 = vrot.slane %v1117_v15, %v3839_v51 }
 0x34d   : > { %v1132_v21 = vcombine.low %v1108_v62, %v1114_v20  ;;  %v1133_v22 = vcombine.high %v1108_v62, %v1114_v20  ;;  %v1366_v23 = vcombine.low %v1341_v16, %v1349_v17  ;;  %v1382_v24 = vcombine.low %v1357_v18, %v1365_v19 }
 0x34e   : > { %v1367_v31 = vcombine.high %v1341_v16, %v1349_v17  ;;  %v1383_v32 = vcombine.high %v1357_v18, %v1365_v19 }
 0x34f   : > { %v1140_v27 = vrot.slane %v1132_v21, %v3839_v51  ;;  %v1147_v28 = vrot.slane %v1133_v22, %v3839_v51  ;;  %v1374_v29 = vrot.slane %v1366_v23, %v3842_v57  ;;  %v1390_v30 = vrot.slane %v1382_v24, %v3842_v57 }
 0x350   : > { %v1381_v48 = vrot.slane %v1367_v31, %v3842_v57  ;;  %v1397_v49 = vrot.slane %v1383_v32, %v3842_v57  ;;  %v1744_v22 = vand.u32 127, %v1121_v43 }
 0x351   : > { %v1148_v33 = vcombine.low %v1124_v25, %v1140_v27  ;;  %v1149_v34 = vcombine.high %v1124_v25, %v1140_v27  ;;  %v1164_v35 = vcombine.low %v1131_v26, %v1147_v28  ;;  %v1165_v37 = vcombine.high %v1131_v26, %v1147_v28 }
 0x352   : > { %v1398_v38 = vcombine.low %v1374_v29, %v1390_v30  ;;  %v1399_v39 = vcombine.high %v1374_v29, %v1390_v30  ;;  %v1400_v0 = vcombine.low %v1381_v48, %v1397_v49  ;;  %v1401_v2 = vcombine.high %v1381_v48, %v1397_v49 }
 0x353   : > { %v1156_v40 = vrot.slane %v1148_v33, %v3842_v57  ;;  %v1163_v41 = vrot.slane %v1149_v34, %v3842_v57  ;;  %v1172_v42 = vrot.slane %v1164_v35, %v3842_v57  ;;  %v1179_v44 = vrot.slane %v1165_v37, %v3842_v57 }
 0x354   : > { %v1402_v45 = vpack.c.bf16 %v1398_v38, %v1398_v38  ;;  %v1403_v46 = vpack.c.bf16 %v1399_v39, %v1399_v39  ;;  %v1404_v9 = vpack.c.bf16 %v1400_v0, %v1400_v0  ;;  %v1405_v11 = vpack.c.bf16 %v1401_v2, %v1401_v2 }
 0x355   : > { %v1184_v50 = vcombine.low %v1156_v40, %v1163_v41  ;;  %v2737_v52 = vcombine.high %v1156_v40, %v1163_v41  ;;  %v1200_v53 = vcombine.low %v1172_v42, %v1179_v44  ;;  %v2738_v54 = vcombine.high %v1172_v42, %v1179_v44  ;;  %v2733_v44 = vld [vmem:[%s852_s20] ss:$0 sm:$0xff]  ;;  %s4255_s20 = scalar_lea.vmem [#allocation5], %s3692_s30 }
 0x356   : > { %v1561_v55 = vsel %vm1556_vm3, %v1402_v45, 0  ;;  %v1607_v56 = vsel %vm1556_vm3, %v1403_v46, 0  ;;  %v1653_v16 = vsel %vm1556_vm3, %v1404_v9, 0  ;;  %v1699_v17 = vsel %vm1556_vm3, %v1405_v11, 0  ;;  %s4256_s14 = smov %s4255_s20 }
 0x357   : > { %v1191_v58 = vrot.slane %v1184_v50, %v3839_v51  ;;  %v1199_v59 = vrot.slane %v2737_v52, %v3839_v51  ;;  %v1207_v60 = vrot.slane %v1200_v53, %v3839_v51  ;;  %v1215_v61 = vrot.slane %v2738_v54, %v3839_v51  ;;  %2840 = vmatpush3.bf16.xpose.msra.mxu1 %v1561_v55 }
 0x358   : > { %2846 = vmatpush3.bf16.xpose.msra.mxu0 %v1607_v56  ;;  %2851 = vmatprep.subr.bf16.mxu1 %v3306_v10  ;;  %vm1745_vm4 = vcmp.le.s32.totalorder %v1744_v22, %v3836_v47  ;;  %v1101_v45 = vadd.f32 %v2733_v44, %v3830_v36 }
 0x359   : > { %v1216_v62 = vcombine.low %v1191_v58, %v1199_v59  ;;  %v1232_v63 = vcombine.low %v1207_v60, %v1215_v61  ;;  %2857 = vmatprep.subr.bf16.mxu0 %v3306_v10  ;;  %v1217_v3 = vcombine.high %v1191_v58, %v1199_v59  ;;  %v1233_v4 = vcombine.high %v1207_v60, %v1215_v61 }
 0x35b   : > { %v1224_v5 = vrot.slane %v1216_v62, %v3842_v57  ;;  %v1240_v6 = vrot.slane %v1232_v63, %v3842_v57  ;;  %v1231_v14 = vrot.slane %v1217_v3, %v3842_v57  ;;  %v1247_v15 = vrot.slane %v1233_v4, %v3842_v57 }
 0x35d   : > { %v1248_v7 = vcombine.low %v1224_v5, %v1240_v6  ;;  %v1249_v8 = vcombine.high %v1224_v5, %v1240_v6  ;;  %v1250_v18 = vcombine.low %v1231_v14, %v1247_v15  ;;  %v1251_v19 = vcombine.high %v1231_v14, %v1247_v15 }
 0x35f   : > { %v1252_v12 = vpack.c.bf16 %v1248_v7, %v1248_v7  ;;  %v1253_v13 = vpack.c.bf16 %v1249_v8, %v1249_v8  ;;  %v1254_v20 = vpack.c.bf16 %v1250_v18, %v1250_v18  ;;  %v1255_v21 = vpack.c.bf16 %v1251_v19, %v1251_v19 }
 0x361   : > { %2842 = vmatmul.mubr.msk.bf16.vlgmr.msra.gmra.mrb[4].mxu1 %vm1556_vm3, %v1252_v12  ;;  %2848 = vmatmul.mubr.msk.bf16.vlgmr.msra.gmra.mrb[8].mxu0 %vm1556_vm3, %v1253_v13 }
 0x362   : > { %2852 = vmatpush3.bf16.xpose.msra.mxu1 %v1653_v16  ;;  %2858 = vmatpush3.bf16.xpose.msra.mxu0 %v1699_v17 }
 0x363   : > { %2853 = vmatprep.mubr.msk.bf16.mxu1 %vm3307_vm2, %v3306_v10  ;;  %2859 = vmatprep.mubr.msk.bf16.mxu0 %vm3307_vm2, %v3306_v10 }
 0x364   : > { %2863 = vmatprep.subr.bf16.mxu1 %v3306_v10  ;;  %2869 = vmatprep.subr.bf16.mxu0 %v3306_v10 }
 0x369   : > { %2854 = vmatmul.mubr.msk.bf16.vlgmr.msra.gmra.mrb[8].mxu1 %vm1556_vm3, %v1254_v20  ;;  %2860 = vmatmul.mubr.msk.bf16.vlgmr.msra.gmra.mrb[12].mxu0 %vm1556_vm3, %v1255_v21 }
 0x36a   : > { %2865 = vmatprep.mubr.msk.bf16.mxu1 %vm3307_vm2, %v3306_v10  ;;  %2871 = vmatprep.mubr.msk.bf16.mxu0 %vm3307_vm2, %v3306_v10 }
 0x434   : > { %v1597_v23 = vpop.f32.mrb[4].mxu1  ;;  %v1643_v24 = vpop.f32.mrb[8].mxu0 }
 0x435   : > { %v1748_v25 = vsel %vm1745_vm4, %v1597_v23, -1e+30  ;;  %v1749_v26 = vsel %vm1745_vm4, %v1643_v24, -1e+30  ;;  %v2843_v27 = vpop.f32.mrb[5].mxu1  ;;  %v2849_v28 = vpop.f32.mrb[9].mxu0 }
 0x436   : > { %v1600_v29 = vpop.f32.mrb[6].mxu1  ;;  %v1646_v30 = vpop.f32.mrb[10].mxu0  ;;  %v1752_v31 = vsel %vm1556_vm3, %v1748_v25, -inf  ;;  %v1755_v32 = vsel %vm1556_vm3, %v1749_v26, -inf }
 0x437   : > { %1753 = vmax.xlane.f32.xlu1 %v1752_v31  ;;  %v2844_v43 = vpop.f32.mrb[7].mxu1  ;;  %1756 = vmax.xlane.f32.xlu0 %v1755_v32  ;;  %v2850_v33 = vpop.f32.mrb[11].mxu0 }
 0x43c   : > { %v1689_v34 = vpop.f32.mrb[8].mxu1  ;;  %v1735_v35 = vpop.f32.mrb[12].mxu0 }
 0x43d   : > { %v2855_v37 = vpop.f32.mrb[9].mxu1  ;;  %v2861_v38 = vpop.f32.mrb[13].mxu0  ;;  %v1750_v46 = vsel %vm1745_vm4, %v1689_v34, -1e+30  ;;  %v1751_v49 = vsel %vm1745_vm4, %v1735_v35, -1e+30 }
 0x43e   : > { %v1692_v39 = vpop.f32.mrb[10].mxu1  ;;  %v1738_v40 = vpop.f32.mrb[14].mxu0  ;;  %v1758_v48 = vsel %vm1556_vm3, %v1750_v46, -inf  ;;  %v1761_v50 = vsel %vm1556_vm3, %v1751_v49, -inf }
 0x43f   : > { %v2856_v41 = vpop.f32.mrb[11].mxu1  ;;  %v2862_v42 = vpop.f32.mrb[15].mxu0 }
 0x448   : > { %1410 = vrot.lane.b32.xlu1 %v1101_v45, %s3310_s4  ;;  %s4264_s4 = sld [smem:[#allocation24_spill]] }
 0x44d   : > { %1407 = vrot.lane.b32.xlu0 %v1101_v45, %s3309_s19 }
 0x44e   : > { %p4266_p3 = scmp.ne.s32.totalorder %s4264_s4, 0 }
 0x450   : > { %p3175_p9 = pnand %p3174_p11, %p4266_p3 }
 0x452   : > { %p3176_p5 = pneg %p3175_p9 }
 0x46c   : > { %1759 = vmax.xlane.f32.xlu1 %v1758_v48 }
 0x470   : > { %1762 = vmax.xlane.f32.xlu1 %v1761_v50 }
 0x481   : > { %1413 = vrot.lane.b32.xlu1 %v1101_v45, %s3308_s28 }
 0x4c4   : > { %v3919_v52 = vpop.xlane.xlu1 %1753  ;;  %v3921_v36 = vpop.xlane.xlu0 %1756 }
 0x4c5   : > { %v1764_v53 = vmax.f32 %v3919_v52, -1e+30  ;;  %v1765_v54 = vmax.f32 %v3921_v36, -1e+30 }
 0x4c7   : > { %v1780_v55 = vsub.f32 %v1748_v25, %v1764_v53  ;;  %v1781_v47 = vsub.f32 %v1749_v26, %v1765_v54 }
 0x4c8   : > { %v1411_v63 = vpop.permute.xlu1 %1410  ;;  %v1408_v11 = vpop.permute.xlu0 %1407 }
 0x4c9   : > { %v1784_v56 = vmul.f32 1.442695, %v1780_v55  ;;  %v1786_v58 = vmul.f32 1.442695, %v1781_v47  ;;  %v1416_v7 = vcombine.low %v1101_v45, %v1411_v63  ;;  %v1417_v8 = vcombine.high %v1101_v45, %v1411_v63 }
 0x4cb   : > { %3055 = vpow2.f32 %v1784_v56  ;;  %v1424_v16 = vrot.slane %v1416_v7, %v3839_v51  ;;  %v1431_v17 = vrot.slane %v1417_v8, %v3839_v51 }
 0x4cc   : > { %3057 = vpow2.f32 %v1786_v58 }
 0x4d5   : > { %v3929_v59 = vpop.eup %3055 }
 0x4d6   : > { %v1796_v60 = vsel %vm1556_vm3, %v3929_v59, 0.0  ;;  %v3933_v61 = vpop.eup %3057  ;;  %v1812_v7 = vpack.c.bf16 %v3929_v59, %v3929_v59 }
 0x4d7   : > { %1797 = vadd.xlane.f32.xlu0 %v1796_v60  ;;  %v1799_v62 = vsel %vm1556_vm3, %v3933_v61, 0.0  ;;  %v1813_v8 = vpack.c.bf16 %v3933_v61, %v3933_v61 }
 0x4d8   : > { %1800 = vadd.xlane.f32.xlu1 %v1799_v62 }
 0x4f9   : > { %v3937_v0 = vpop.xlane.xlu1 %1759 }
 0x4fa   : > { %v1766_v2 = vmax.f32 %v3937_v0, -1e+30 }
 0x4fc   : > { %v1782_v3 = vsub.f32 %v1750_v46, %v1766_v2 }
 0x4fd   : > { %v3942_v4 = vpop.xlane.xlu1 %1762 }
 0x4fe   : > { %v1788_v5 = vmul.f32 1.442695, %v1782_v3  ;;  %v1767_v6 = vmax.f32 %v3942_v4, -1e+30 }
 0x500   : > { %v1783_v9 = vsub.f32 %v1751_v49, %v1767_v6  ;;  %3059 = vpow2.f32 %v1788_v5 }
 0x501   : > { %v1414_v12 = vpop.permute.xlu1 %1413 }
 0x502   : > { %v1790_v13 = vmul.f32 1.442695, %v1783_v9  ;;  %v1432_v14 = vcombine.low %v1408_v11, %v1414_v12  ;;  %v1433_v15 = vcombine.high %v1408_v11, %v1414_v12  ;;  %v1768_v12 = vsub.f32 -1e+30, %v1764_v53 }
 0x504   : > { %v1440_v18 = vrot.slane %v1432_v14, %v3839_v51  ;;  %v1447_v19 = vrot.slane %v1433_v15, %v3839_v51  ;;  %3061 = vpow2.f32 %v1790_v13  ;;  %v1769_v13 = vsub.f32 -1e+30, %v1765_v54 }
 0x505   : > { %v1772_v14 = vmul.f32 1.442695, %v1768_v12 }
 0x506   : > { %v1448_v20 = vcombine.low %v1424_v16, %v1440_v18  ;;  %v1449_v21 = vcombine.high %v1424_v16, %v1440_v18  ;;  %v1464_v22 = vcombine.low %v1431_v17, %v1447_v19  ;;  %v1465_v23 = vcombine.high %v1431_v17, %v1447_v19 }
 0x507   : > { %v1774_v15 = vmul.f32 1.442695, %v1769_v13  ;;  %3063 = vpow2.f32 %v1772_v14  ;;  %v1770_v16 = vsub.f32 -1e+30, %v1766_v2  ;;  %v1771_v17 = vsub.f32 -1e+30, %v1767_v6 }
 0x508   : > { %v1456_v24 = vrot.slane %v1448_v20, %v3842_v57  ;;  %v1463_v25 = vrot.slane %v1449_v21, %v3842_v57  ;;  %v1472_v26 = vrot.slane %v1464_v22, %v3842_v57  ;;  %v1479_v27 = vrot.slane %v1465_v23, %v3842_v57 }
 0x509   : > { %3065 = vpow2.f32 %v1774_v15  ;;  %v1776_v18 = vmul.f32 1.442695, %v1770_v16  ;;  %v1778_v19 = vmul.f32 1.442695, %v1771_v17  ;;  %v3045_v16 = vld [vmem:[%s4255_s20] sm:$0xff]  }
 0x50a   : > { %v1484_v28 = vcombine.low %v1456_v24, %v1463_v25  ;;  %v2741_v29 = vcombine.high %v1456_v24, %v1463_v25  ;;  %v1500_v30 = vcombine.low %v1472_v26, %v1479_v27  ;;  %v2742_v31 = vcombine.high %v1472_v26, %v1479_v27  ;;  %v3060_v32 = vpop.eup %3059 }
 0x50b   : > { %v1802_v37 = vsel %vm1556_vm3, %v3060_v32, 0.0  ;;  %v1814_v59 = vpack.c.bf16 %v3060_v32, %v3060_v32  ;;  %3067 = vpow2.f32 %v1776_v18 }
 0x50c   : > { %v1491_v43 = vrot.slane %v1484_v28, %v3839_v51  ;;  %v1499_v33 = vrot.slane %v2741_v29, %v3839_v51  ;;  %v1507_v34 = vrot.slane %v1500_v30, %v3839_v51  ;;  %v1515_v35 = vrot.slane %v2742_v31, %v3839_v51  ;;  %1803 = vadd.xlane.f32.xlu0 %v1802_v37 }
 0x50d   : > { %3069 = vpow2.f32 %v1778_v19 }
 0x50e   : > { %v1516_v38 = vcombine.low %v1491_v43, %v1499_v33  ;;  %v1532_v39 = vcombine.low %v1507_v34, %v1515_v35  ;;  %v1517_v40 = vcombine.high %v1491_v43, %v1499_v33  ;;  %v1533_v41 = vcombine.high %v1507_v34, %v1515_v35  ;;  %v3062_v42 = vpop.eup %3061 }
 0x50f   : > { %v1805_v44 = vsel %vm1556_vm3, %v3062_v42, 0.0  ;;  %v1815_v61 = vpack.c.bf16 %v3062_v42, %v3062_v42 }
 0x510   : > { %v1524_v45 = vrot.slane %v1516_v38, %v3842_v57  ;;  %v1540_v46 = vrot.slane %v1532_v39, %v3842_v57  ;;  %v1531_v48 = vrot.slane %v1517_v40, %v3842_v57  ;;  %v1547_v49 = vrot.slane %v1533_v41, %v3842_v57  ;;  %1806 = vadd.xlane.f32.xlu0 %v1805_v44 }
 0x511   : > { %v3064_v20 = vpop.eup %3063 }
 0x512   : > { %v1548_v50 = vcombine.low %v1524_v45, %v1540_v46  ;;  %v1549_v55 = vcombine.high %v1524_v45, %v1540_v46  ;;  %v1550_v47 = vcombine.low %v1531_v48, %v1547_v49  ;;  %v1551_v56 = vcombine.high %v1531_v48, %v1547_v49 }
 0x513   : > { %v3066_v52 = vpop.eup %3065  ;;  %v1792_v21 = vmul.f32 0.0, %v3064_v20 }
 0x514   : > { %v1552_v58 = vpack.c.bf16 %v1548_v50, %v1548_v50  ;;  %v1553_v60 = vpack.c.bf16 %v1549_v55, %v1549_v55  ;;  %v1554_v3 = vpack.c.bf16 %v1550_v47, %v1550_v47  ;;  %v1555_v5 = vpack.c.bf16 %v1551_v56, %v1551_v56 }
 0x515   : > { %v1793_v54 = vmul.f32 0.0, %v3066_v52  ;;  %v3068_v25 = vpop.eup %3067 }
 0x516   : > { %v1821_v62 = vsel %vm1819_vm5, %v1552_v58, 0  ;;  %v1867_v63 = vsel %vm1819_vm5, %v1553_v60, 0  ;;  %v1913_v9 = vsel %vm1819_vm5, %v1554_v3, 0  ;;  %v1959_v11 = vsel %vm1819_vm5, %v1555_v5, 0 }
 0x517   : > { %2864 = vmatpush3.bf16.msra.mxu1 %v1821_v62  ;;  %2870 = vmatpush3.bf16.msra.mxu0 %v1867_v63  ;;  %v3070_v0 = vpop.eup %3069  ;;  %v1794_v2 = vmul.f32 0.0, %v3068_v25  ;;  %v3046_v25 = vld [vmem:[%s4256_s14 + $0x8] sm:$0xff]   ;;  %s4265_s14 = sld [smem:[#allocation43_spill]] }
 0x518   : > { %2875 = vmatprep.subr.bf16.mxu1 %v3306_v10  ;;  %2881 = vmatprep.subr.bf16.mxu0 %v3306_v10  ;;  %v1795_v6 = vmul.f32 0.0, %v3070_v0 }
 0x51a   : > { %2866 = vmatmul.mubr.msk.bf16.vlgmr.msra.gmra.mrb[12].mxu1 %vm1556_vm3, %v1812_v7  ;;  %2872 = vmatmul.mubr.msk.bf16.vlgmr.msra.gmra.mrb[16].mxu0 %vm1556_vm3, %v1813_v8 }
 0x51b   : > { %2876 = vmatpush3.bf16.msra.mxu1 %v1913_v9  ;;  %2882 = vmatpush3.bf16.msra.mxu0 %v1959_v11 }
 0x51c   : > { %2877 = vmatprep.mubr.msk.bf16.mxu1 %vm3307_vm2, %v3306_v10  ;;  %2883 = vmatprep.mubr.msk.bf16.mxu0 %vm3307_vm2, %v3306_v10 }
 0x51d   : > { %2887 = vmatprep.subr.bf16.mxu1 %v3306_v10  ;;  %2895 = vmatprep.subr.bf16.mxu0 %v3306_v10 }
 0x522   : > { %2878 = vmatmul.mubr.msk.bf16.vlgmr.msra.gmra.mrb[16].mxu1 %vm1556_vm3, %v1814_v59  ;;  %2884 = vmatmul.mubr.msk.bf16.vlgmr.msra.gmra.mrb[20].mxu0 %vm1556_vm3, %v1815_v61 }
 0x523   : > { %2891 = vmatprep.mubr.msk.bf16.mxu1 %vm3307_vm2, %v3306_v10  ;;  %2899 = vmatprep.mubr.msk.bf16.mxu0 %vm3307_vm2, %v3306_v10 }
 0x524   : > { %2888 = vmatpush3.bf16.msra.mxu1 %v3045_v16 }
 0x525   : > { %2889 = vmatprep.subr.bf16.mxu1 %v3306_v10 }
 0x528   : > { %2890 = vmatpush3.bf16.msra.mxu1 %v3046_v25 }
 0x529   : > { %2903 = vmatprep.subr.bf16.mxu1 %v3306_v10 }
 0x564   : > { %v1798_v53 = vpop.xlane.xlu0 %1797 }
 0x565   : > { %v1801_v36 = vpop.xlane.xlu1 %1800  ;;  %v1808_v22 = vadd.f32 %v1798_v53, %v1792_v21 }
 0x566   : > { %v1809_v24 = vadd.f32 %v1801_v36, %v1793_v54 }
 0x567   : > { %3071 = vrcp.f32 %v1808_v22 }
 0x568   : > { %3073 = vrcp.f32 %v1809_v24 }
 0x571   : > { %v3072_v30 = vpop.eup %3071 }
 0x572   : > { %v3074_v34 = vpop.eup %3073 }
 0x599   : > { %v1804_v23 = vpop.xlane.xlu0 %1803 }
 0x59a   : > { %v1810_v26 = vadd.f32 %v1804_v23, %v1794_v2 }
 0x59c   : > { %3075 = vrcp.f32 %v1810_v26 }
 0x59d   : > { %v1807_v4 = vpop.xlane.xlu0 %1806 }
 0x59e   : > { %v1811_v27 = vadd.f32 %v1807_v4, %v1795_v6 }
 0x5a0   : > { %3077 = vrcp.f32 %v1811_v27 }
 0x5a6   : > { %v3076_v45 = vpop.eup %3075 }
 0x5aa   : > { %v3078_v55 = vpop.eup %3077 }
 0x5ed   : > { %v1857_v28 = vpop.f32.mrb[12].mxu1  ;;  %v1903_v29 = vpop.f32.mrb[16].mxu0 }
 0x5ee   : > { %v2001_v31 = vadd.f32 %v1857_v28, %v1792_v21  ;;  %v2002_v32 = vadd.f32 %v1903_v29, %v1793_v54  ;;  %v2867_v43 = vpop.f32.mrb[13].mxu1  ;;  %v2873_v33 = vpop.f32.mrb[17].mxu0 }
 0x5ef   : > { %v1860_v35 = vpop.f32.mrb[14].mxu1  ;;  %v1906_v37 = vpop.f32.mrb[18].mxu0 }
 0x5f0   : > { %v2009_v38 = vmul.f32 %v3072_v30, %v2001_v31  ;;  %v2010_v39 = vmul.f32 %v3074_v34, %v2002_v32  ;;  %v2868_v40 = vpop.f32.mrb[15].mxu1  ;;  %v2874_v41 = vpop.f32.mrb[19].mxu0 }
 0x5f5   : > { %v1949_v42 = vpop.f32.mrb[16].mxu1  ;;  %v1995_v44 = vpop.f32.mrb[20].mxu0 }
 0x5f6   : > { %v2003_v46 = vadd.f32 %v1949_v42, %v1794_v2  ;;  %v2004_v48 = vadd.f32 %v1995_v44, %v1795_v6  ;;  %v2879_v49 = vpop.f32.mrb[17].mxu1  ;;  %v2885_v50 = vpop.f32.mrb[21].mxu0 }
 0x5f7   : > { %v1952_v47 = vpop.f32.mrb[18].mxu1  ;;  %v1998_v56 = vpop.f32.mrb[22].mxu0 }
 0x5f8   : > { %v2011_v58 = vmul.f32 %v3076_v45, %v2003_v46  ;;  %v2012_v60 = vmul.f32 %v3078_v55, %v2004_v48  ;;  %v2880_v62 = vpop.f32.mrb[19].mxu1  ;;  %v2886_v63 = vpop.f32.mrb[23].mxu0 }
 0x5fa   : > { %v2013_v3 = vcombine.low %v2009_v38, %v2011_v58  ;;  %v2014_v5 = vcombine.high %v2009_v38, %v2011_v58  ;;  %v2029_v7 = vcombine.low %v2010_v39, %v2012_v60  ;;  %v2030_v8 = vcombine.high %v2010_v39, %v2012_v60  ;;  %v2753_v39 = vld [vmem:[%s4258_s25] ss:$0 sm:$0xff]  ;;  %v3048_v60 = vld [vmem:[%s712_s11 + $0x8] sm:$0xff]  }
 0x5fb   : > { %v3047_v58 = vld [vmem:[%s712_s11] sm:$0xff]  }
 0x5fc   : > { %v2021_v9 = vrot.slane %v2013_v3, %v3839_v51  ;;  %v2028_v11 = vrot.slane %v2014_v5, %v3839_v51  ;;  %v2037_v59 = vrot.slane %v2029_v7, %v3839_v51  ;;  %v2044_v61 = vrot.slane %v2030_v8, %v3839_v51  ;;  %2896 = vmatpush3.bf16.msra.mxu0 %v3047_v58  ;;  %v2757_v5 = vld [vmem:[%s858_s27] ss:$0 sm:$0xff] }
 0x5fd   : > { %2897 = vmatprep.subr.bf16.mxu0 %v3306_v10  ;;  %v2758_v8 = vld [vmem:[%s861_s3] ss:$0 sm:$0xff] }
 0x5fe   : > { %v2045_v12 = vcombine.low %v2021_v9, %v2037_v59  ;;  %v2046_v13 = vcombine.high %v2021_v9, %v2037_v59  ;;  %v2061_v14 = vcombine.low %v2028_v11, %v2044_v61  ;;  %v2062_v15 = vcombine.high %v2028_v11, %v2044_v61  ;;  %v3049_v61 = vld [vmem:[%s3759_s8] sm:$0xff]  }
 0x600   : > { %v2053_v17 = vrot.slane %v2045_v12, %v3842_v57  ;;  %v2060_v18 = vrot.slane %v2046_v13, %v3842_v57  ;;  %v2069_v19 = vrot.slane %v2061_v14, %v3842_v57  ;;  %v2076_v20 = vrot.slane %v2062_v15, %v3842_v57  ;;  %2898 = vmatpush3.bf16.msra.mxu0 %v3048_v60  ;;  %v3050_v12 = vld [vmem:[%s3759_s8 + $0x8] sm:$0xff]   ;;  %v3051_v13 = vld [vmem:[%s3759_s8 + $0x10] sm:$0xff]   ;;  %v3052_v14 = vld [vmem:[%s3759_s8 + $0x18] sm:$0xff]  }
 0x601   : > { %v2759_v15 = vld [vmem:[%s864_s18] ss:$0 sm:$0xff] }
 0x602   : > { %v2081_v52 = vcombine.low %v2053_v17, %v2060_v18  ;;  %v2751_v53 = vcombine.high %v2053_v17, %v2060_v18  ;;  %v2097_v21 = vcombine.low %v2069_v19, %v2076_v20  ;;  %v2752_v36 = vcombine.high %v2069_v19, %v2076_v20 }
 0x604   : > { %v2088_v54 = vrot.slane %v2081_v52, %v3839_v51  ;;  %v2096_v22 = vrot.slane %v2751_v53, %v3839_v51  ;;  %v2104_v23 = vrot.slane %v2097_v21, %v3839_v51  ;;  %v2112_v24 = vrot.slane %v2752_v36, %v3839_v51 }
 0x606   : > { %v2114_v0 = vcombine.high %v2088_v54, %v2096_v22  ;;  %v2130_v2 = vcombine.high %v2104_v23, %v2112_v24  ;;  %v2113_v4 = vcombine.low %v2088_v54, %v2096_v22  ;;  %v2129_v6 = vcombine.low %v2104_v23, %v2112_v24  ;;  %v2763_v22 = vld [vmem:[%s872_s7] ss:$0 sm:$0xff]  ;;  %s2422_s7 = scalar_lea.sflag [#allocation4], %s3678_s24 }
 0x608   : > { %v2128_v26 = vrot.slane %v2114_v0, %v3842_v57  ;;  %v2144_v27 = vrot.slane %v2130_v2, %v3842_v57  ;;  %v2121_v28 = vrot.slane %v2113_v4, %v3842_v57  ;;  %v2137_v29 = vrot.slane %v2129_v6, %v3842_v57 }
 0x60a   : > { %v2147_v30 = vcombine.low %v2128_v26, %v2144_v27  ;;  %v2146_v31 = vcombine.high %v2121_v28, %v2137_v29  ;;  %v2148_v51 = vcombine.high %v2128_v26, %v2144_v27  ;;  %v2145_v32 = vcombine.low %v2121_v28, %v2137_v29 }
 0x60c   : > { %2154 = vrot.lane.b32.xlu0 %v2147_v30, %s3313_s22  ;;  %2150 = vrot.lane.b32.xlu1 %v2146_v31, %s3314_s6  ;;  %s4069_s22 = scalar_lea.hbm %s4265_s14, %s2770_s13  ;;  %s3316_s6 = smov [#allocation8]  }
 0x610   : > { %2158 = vrot.lane.b32.xlu1 %v2148_v51, %s3315_s17  ;;  %s3177_s17 = sshll.u32 %s3316_s6, 4  ;;  %s3178_s17 = int_to_ptr.vmem [resolvable:$false] %s3177_s17 }
 0x611   : > { %s3179_s10 = scalar_lea.vmem %s3178_s17, 256  ;;  %p3180_p8 = scmp.lt.s32.totalorder %s4071_s0, %s3178_s17 }
 0x612   : > { %p3181_p13 = scmp.lt.s32.totalorder %s3179_s10, %s3173_s21 }
 0x614   : > { %p3182_p12 = por %p3181_p13, %p3180_p8 }
 0x616   : > { %p3183_p2 = pnand %p3182_p12, %p3176_p5 }
 0x67e   : > { %v2151_v43 = vpop.permute.xlu1 %2150  ;;  %v2155_v33 = vpop.permute.xlu0 %2154 }
 0x67f   : > { %v2161_v34 = vsel %vm1556_vm3, %v2145_v32, %v2151_v43 }
 0x680   : > { %v2163_v37 = vsel %vm2162_vm6, %v2161_v34, %v2155_v33 }
 0x682   : > { %v2159_v35 = vpop.permute.xlu1 %2158 }
 0x683   : > { %v2165_v57 = vsel %vm2164_vm7, %v2163_v37, %v2159_v35 }
 0x684   : > { %v2166_v38 = vpack.c.bf16 %v2165_v57, %v2165_v57 }
 0x686   : > { %2892 = vmatmul.mubr.msk.bf16.vlgmr.msra.gmra.mrb[20].mxu1 %vm884_vm1, %v2166_v38 }
 0x687   : > { %2911 = vmatprep.mubr.msk.bf16.mxu1 %vm3307_vm2, %v3306_v10  ;;  %2904 = vmatpush3.bf16.msra.mxu1 %v3049_v61 }
 0x688   : > { %2905 = vmatprep.subr.bf16.mxu1 %v3306_v10 }
 0x68b   : > { %2906 = vmatpush3.bf16.msra.mxu1 %v3050_v12 }
 0x68c   : > { %2907 = vmatprep.subr.bf16.mxu1 %v3306_v10 }
 0x68f   : > { %2908 = vmatpush3.bf16.msra.mxu1 %v3051_v13 }
 0x690   : > { %2909 = vmatprep.subr.bf16.mxu1 %v3306_v10 }
 0x693   : > { %2910 = vmatpush3.bf16.msra.mxu1 %v3052_v14 }
 0x759   : > { %v2227_v40 = vpop.f32.mrb[20].mxu1 }
 0x75a   : > { %v2228_v41 = vadd.f32 %v2753_v39, %v2227_v40  ;;  %v2893_v42 = vpop.f32.mrb[21].mxu1 }
 0x75b   : > { %v2230_v44 = vpop.f32.mrb[22].mxu1 }
 0x75c   : > { %v2233_v45 = vadd.f32 %v2228_v41, %v3774_v1  ;;  %v2894_v46 = vpop.f32.mrb[23].mxu1 }
 0x75e   : > { %v2236_v48 = vsel %vm884_vm1, %v2233_v45, 0.0 }
 0x75f   : > { %2237 = vadd.xlane.f32.xlu1 %v2236_v48 }
 0x7ec   : > { %v2238_v49 = vpop.xlane.xlu1 %2237 }
 0x7ed   : > { %v2239_v50 = vmul.f32 0.03125, %v2238_v49 }
 0x7ef   : > { %v2240_v55 = vsub.f32 %v2233_v45, %v2239_v50 }
 0x7f1   : > { %v2241_v47 = vmul.f32 %v2240_v55, %v2240_v55 }
 0x7f3   : > { %v2242_v56 = vsel %vm884_vm1, %v2241_v47, 0.0 }
 0x7f4   : > { %2243 = vadd.xlane.f32.xlu0 %v2242_v56 }
 0x881   : > { %v2244_v1 = vpop.xlane.xlu0 %2243 }
 0x882   : > { %v2245_v62 = vmul.f32 0.03125, %v2244_v1 }
 0x884   : > { %v2246_v63 = vadd.f32 1e-05, %v2245_v62 }
 0x886   : > { %3079 = vrsqrt.f32 %v2246_v63 }
 0x890   : > { %v3080_v3 = vpop.eup %3079 }
 0x891   : > { %v2248_v7 = vmul.f32 %v3080_v3, %v2240_v55 }
 0x893   : > { %v2255_v9 = vmul.f32 %v2757_v5, %v2248_v7 }
 0x895   : > { %v2262_v11 = vadd.f32 %v2758_v8, %v2255_v9 }
 0x897   : > { %v2263_v59 = vpack.c.bf16 %v2262_v11, %v2262_v11 }
 0x899   : > { %2900 = vmatmul.mubr.msk.bf16.vlgmr.msra.gmra.mrb[24].mxu0 %vm884_vm1, %v2263_v59 }
 0x96c   : > { %v2324_v16 = vpop.f32.mrb[24].mxu0 }
 0x96d   : > { %v2325_v17 = vadd.f32 %v2759_v15, %v2324_v16  ;;  %v2901_v18 = vpop.f32.mrb[25].mxu0 }
 0x96e   : > { %v2327_v19 = vpop.f32.mrb[26].mxu0 }
 0x96f   : > { %v2331_v20 = vmul.f32 0.70710677, %v2325_v17  ;;  %v2902_v52 = vpop.f32.mrb[27].mxu0  ;;  %v2330_v21 = vmul.f32 0.5, %v2325_v17 }
 0x971   : > { %3081 = verf.f32 %v2331_v20 }
 0x97b   : > { %v3082_v53 = vpop.eup %3081 }
 0x97c   : > { %v2333_v10 = vadd.f32 1.0, %v3082_v53 }
 0x97e   : > { %v2334_v36 = vmul.f32 %v2333_v10, %v2330_v21 }
 0x980   : > { %v2335_v54 = vpack.c.bf16 %v2334_v36, %v2334_v36 }
 0x982   : > { %2912 = vmatmul.mubr.msk.bf16.vlgmr.msra.gmra.mrb[24].mxu1 %vm2375_vm8, %v2335_v54 }
 0xa55   : > { %v2413_v23 = vpop.f32.mrb[24].mxu1 }
 0xa56   : > { %v2414_v24 = vadd.f32 %v2763_v22, %v2413_v23  ;;  %v2913_v25 = vpop.f32.mrb[25].mxu1 }
 0xa57   : > { %v2416_v0 = vpop.f32.mrb[26].mxu1 }
 0xa58   : > { %v2419_v2 = vadd.f32 %v2414_v24, %v2233_v45  ;;  %v2914_v4 = vpop.f32.mrb[27].mxu1 }
 0xa5a   : > { %2420 = vst.msk [vmem:[%s3768_s23] sm:$0xff] %vm884_vm1, %v2419_v2 }
 0xa5b   : > { %3186 = shalt.err (!%p3183_p2)
}
 0xa5c   : > { %s3187_s24 = scalar_lea.hbm %s4069_s22, 128  ;;  %s3191_s16 = scalar_lea.hbm %s4265_s14, 256 }
 0xa5d   : > { %p3188_p1 = scmp.ne.s32.totalorder %s4069_s22, %s3187_s24  ;;  %p3192_p6 = scmp.lt.u32.totalorder %s4069_s22, %s4265_s14 }
 0xa5e   : > { %p3193_p7 = scmp.lt.u32.totalorder %s3191_s16, %s3187_s24  ;;  %p3195_p11 = scmp.lt.u32.totalorder %s3187_s24, %s4069_s22 }
 0xa5f   : > { %p3189_p10 = pnand %p3188_p1, %p4266_p3 }
 0xa60   : > { %p3194_p4 = por %p3193_p7, %p3192_p6 }
 0xa61   : > { %p3190_p0 = pneg %p3189_p10 }
 0xa62   : > { %p3196_p9 = por %p3195_p11, %p3194_p4 }
 0xa64   : > { %p3197_p5 = pnand %p3196_p9, %p3190_p0 }
 0xa66   : > { %3200 = shalt.err (!%p3197_p5)
}
 0xa67   : > { %2921 = dma.vmem_to_hbm [thread:$0]  (%p4266_p3), %s4071_s0, 128, %s4069_s22, %s2422_s7  }
 0xa68 PF: > { %s4267_s28 = sld [smem:[#allocation20_spill]]  ;;  %s4268_s19 = sld [smem:[#allocation14_spill]] }
 0xa69   : > { %s4269_s30 = sld [smem:[#allocation26_spill]] }
 0xa6e   : > { %p2938_p8 = scmp.ge.s32.totalorder %s4267_s28, 2  ;;  %s2447_s5 = sand.u32 1, %s4268_s19  }
 0xa6f   : > { %p4270_p13 = scmp.ne.s32.totalorder %s4269_s30, 0  ;;  %s2448_s11 = scalar_lea.sflag [#allocation4], %s2447_s5 }
 0xa71   : > { %p2934_p12 = pnand %p2938_p8, %p4270_p13 }
 0xa73   : > { %3254 = dma.done.wait (!%p2934_p12), %s2448_s11, 128  }
 0xa74   : > { %3256 = vsyncadd (!%p2934_p12), %s2448_s11, 4294967168  ;;  %s36_s1 = sadd.s32 1, %s4267_s28   ;;  %s4271_s24 = sld [smem:[#allocation12_spill]] }
 0xa75   : > { %p33_p2 = scmp.ge.s32.totalorder %s36_s1, 6   ;;  %s4272_s25 = sld [smem:[#allocation13_spill]] }
 0xa76   : > { %s4273_s26 = sld [smem:[#allocation22_spill]]  ;;  %s4274_s27 = sld [smem:[#allocation15_spill]] }
 0xa77   : > { %s4275_s28 = sld [smem:[#allocation16_spill]]  ;;  %s4276_s29 = sld [smem:[#allocation25_spill]] }
 0xa78   : > { %s4277_s0 = sld [smem:[#allocation18_spill]]  ;;  %s4278_s30 = sld [smem:[#allocation19_spill]] }
 0xa79   : > { %s4279_s18 = sld [smem:[#allocation21_spill]]  ;;  %s4280_s19 = sld [smem:[#allocation23_spill]] }
 0xa7a   :  { %35 = sbr.rel (!%p33_p2) target bundleno = 29 (0x1d), region = 203 }
 0xa81   :  { %2453 = vsyncpa [#allocation3], 1 }
 0xa82   :  { %2455 = vsyncpa [#allocation3 + $0x1], 1 }
 0xa83   :  { %2456 = vsyncpa [#allocation6], 1 }
 0xa84   :  { %2458 = vsyncpa [#allocation6 + $0x1], 1 }
 0xa85   :  { %2459 = vsyncpa [#allocation4], 1 }
 0xa86   :  { %2461 = vsyncpa [#allocation4 + $0x1], 1 }

</bundles_post_ra>
